<compile_context>
chip_gen: v7x
topology: tpu7x:2x2x1
jax: 0.10.0
libtpu: 0.0.40
codegen_flags: <defaults>
</compile_context>

<pallas_src>
import jax
import jax.numpy as jnp
import numpy as np
from jax.experimental import pallas as pl
from jax.experimental.pallas import tpu as pltpu


def _pool_out(size, pad):
    """PyTorch MaxPool2d(kernel=2, stride=2, padding=pad, floor mode) output size."""
    return (size + 2 * pad - 2) // 2 + 1


# ---------------------------------------------------------------------------
# In-kernel helpers (operate on a whole (C, H, W) slab; no channel loops).
# ---------------------------------------------------------------------------
def _shift_left(v, k=1):
    """out[..., i] = v[..., i + k]; the last k lanes replicate (never selected)."""
    return jnp.concatenate([v[:, :, k:], v[:, :, -k:]], axis=2)


def _shift_right(v):
    """out[..., i] = v[..., i - 1]; lane 0 replicates itself (acts like -inf pad under max)."""
    return jnp.concatenate([v[:, :, :1], v[:, :, :-1]], axis=2)


def _lane_decimate(m, out_w, step, clamp):
    """out[..., j] = m[..., step*j] (clamped to W-1 if `clamp`) via ONE one-hot MXU matmul."""
    c, h, w = m.shape
    row = jax.lax.broadcasted_iota(jnp.int32, (w, out_w), 0)
    col = jax.lax.broadcasted_iota(jnp.int32, (w, out_w), 1)
    src = step * col
    if clamp:
        src = jnp.minimum(src, w - 1)
    sel = (row == src).astype(jnp.float32)
    out = jnp.dot(m.reshape(c * h, w).astype(jnp.float32), sel,
                  preferred_element_type=jnp.float32,
                  precision=jax.lax.Precision.HIGHEST)
    return out.reshape(c, h, out_w)


def _row_pool(src_ref, h, pad):
    """2:1 sublane-decimating max over a (C, h, W) VMEM ref (strided loads + VPU max).

    PyTorch semantics: kernel 2, stride 2, -inf padding `pad`, floor mode.
    """
    ho = _pool_out(h, pad)
    if pad == 0:
        return jnp.maximum(src_ref[:, pl.ds(0, ho, stride=2), :],
                           src_ref[:, pl.ds(1, ho, stride=2), :])
    # pad == 1: output row 0 pairs with padding -> just input row 0.
    first = src_ref[:, pl.ds(0, 1), :]
    if ho == 1:
        return first
    a = src_ref[:, pl.ds(1, ho - 1, stride=2), :]      # rows 1, 3, ..., 2*ho-3 (always valid)
    nb = (h - 1) // 2                                  # how many partner rows 2, 4, ... exist
    if nb == 0:
        rest = a
    elif nb == ho - 1:                                 # h odd: every 'a' row has a partner
        rest = jnp.maximum(a, src_ref[:, pl.ds(2, nb, stride=2), :])
    else:                                              # h even: last output row = last input row
        b = src_ref[:, pl.ds(2, nb, stride=2), :]
        rest = jnp.concatenate([jnp.maximum(a[:, :nb, :], b), a[:, nb:, :]], axis=1)
    return jnp.concatenate([first, rest], axis=1)


def _col_pool(v, pad):
    """2:1 lane-decimating max on a (C, h, w) value: pairwise max (VPU) + one sel matmul."""
    c, h, w = v.shape
    wo = _pool_out(w, pad)
    if pad == 0:
        m = jnp.maximum(v, _shift_left(v, 1))
        return _lane_decimate(m, wo, 2, clamp=False)
    # pad == 1
    m = jnp.maximum(v, _shift_right(v))                # m[..., 0] == v[..., 0] (pad ignored)
    if w % 2 == 0:
        # Last output column pairs with padding: keep the raw last lane there.
        lane = jax.lax.broadcasted_iota(jnp.int32, v.shape, 2)
        m = jnp.where(lane == w - 1, v, m)
    return _lane_decimate(m, wo, 2, clamp=True)


# ---------------------------------------------------------------------------
# Fused kernel: init_ds + ds1..ds4, one (sample, channel-block) per grid step.
# ---------------------------------------------------------------------------
def _make_kernel(dims):
    Hb, Wb, h1, w1, h2, w2, h3, w3, h4, w4 = dims

    def kernel(x_ref, x1_ref, x2_ref, x3_ref, x4_ref, x0_ref):
        # --- init_ds: two pad=0 2x2/s2 pools == one 4x4/s4 max pool (exact in floor mode).
        r = x_ref[:, pl.ds(0, Hb, stride=4), :]
        for k in range(1, 4):                                  # 4-tap sublane max, pure VPU
            r = jnp.maximum(r, x_ref[:, pl.ds(k, Hb, stride=4), :])
        m = jnp.maximum(r, _shift_left(r, 1))
        m = jnp.maximum(m, _shift_left(m, 2))                  # m[..., 4j] = max of 4 lanes
        x0_ref[...] = _lane_decimate(m, Wb, 4, clamp=False).astype(x0_ref.dtype)

        # --- ds1..ds4: pyramid stays VMEM-resident; each level strided-reads the
        #     previous level's (scratch / output) ref for the sublane decimation.
        def level(src_ref, dst_ref, h, pad):
            v = _row_pool(src_ref, h, pad)
            dst_ref[...] = _col_pool(v, pad).astype(dst_ref.dtype)

        level(x0_ref, x1_ref, Hb, 1)
        level(x1_ref, x2_ref, h1, 0)
        level(x2_ref, x3_ref, h2, 1)
        level(x3_ref, x4_ref, h3, 0)

    return kernel


def _vmem_capacity_bytes():
    try:
        return int(pltpu.get_tpu_info().vmem_capacity_bytes)
    except Exception:
        return 64 << 20          # conservative default (v7x: 64 MiB per TensorCore)


def iter_downsample_forward(x):
    """Iter_Downsample forward.  x: (N, C, H, W) NCHW.  Returns (x1, x2, x3, x4), same dtype."""
    N, C, H, W = x.shape
    dtype = x.dtype
    itemsize = jnp.dtype(dtype).itemsize

    Hb, Wb = H // 4, W // 4                               # after init_ds
    h1, w1 = _pool_out(Hb, 1), _pool_out(Wb, 1)
    h2, w2 = _pool_out(h1, 0), _pool_out(w1, 0)
    h3, w3 = _pool_out(h2, 1), _pool_out(w2, 1)
    h4, w4 = _pool_out(h3, 0), _pool_out(w3, 0)
    assert min(Hb, Wb, h4, w4) >= 1, "input spatial size too small for this module"

    # ---- channel-block size: largest divisor of C whose working set fits the budget.
    vmem_cap = _vmem_capacity_bytes()
    budget = max(vmem_cap // 12, 2 << 20)

    def working_set(cb):
        in_blk = cb * H * W * itemsize                     # double-buffered input block
        inter = cb * Hb * W * itemsize                     # row-reduced slab before lane decim
        small = cb * (Hb * Wb + h1 * w1 + h2 * w2 + h3 * w3 + h4 * w4) * 4
        return 2 * in_blk + 2 * inter + 3 * small

    divisors = [d for d in range(1, C + 1) if C % d == 0]
    fitting = [d for d in divisors if working_set(d) <= budget]
    Cb = max(fitting) if fitting else 1
    # TODO(synk): for inputs where even Cb=1 exceeds the VMEM budget (very large H*W),
    # fall back to a row-tiled two-kernel split; not needed for SSD-scale images.
    if N * (C // Cb) < 2:                                  # keep both megacore TCs busy
        smaller = [d for d in divisors if d < Cb]
        if smaller:
            Cb = max(smaller)

    grid = (N, C // Cb)
    sizes = ((h1, w1), (h2, w2), (h3, w3), (h4, w4))
    out_shape = tuple(jax.ShapeDtypeStruct((N, C, hh, ww), dtype) for hh, ww in sizes)
    out_specs = tuple(pl.BlockSpec((None, Cb, hh, ww), lambda n, c: (n, c, 0, 0))
                      for hh, ww in sizes)

    matmul_flops = 2 * N * C * (Hb * W * Wb + h1 * Wb * w1 + h2 * w1 * w2
                                + h3 * w2 * w3 + h4 * w3 * w4)
    vpu_flops = 4 * N * C * H * W
    out_elems = N * C * (h1 * w1 + h2 * w2 + h3 * w3 + h4 * w4)

    kernel = _make_kernel((Hb, Wb, h1, w1, h2, w2, h3, w3, h4, w4))
    x1, x2, x3, x4 = pl.pallas_call(
        kernel,
        out_shape=out_shape,
        grid=grid,
        in_specs=[pl.BlockSpec((None, Cb, H, W), lambda n, c: (n, c, 0, 0))],
        out_specs=out_specs,
        scratch_shapes=[pltpu.VMEM((Cb, Hb, Wb), dtype)],   # init_ds result stays in VMEM
        compiler_params=pltpu.CompilerParams(
            dimension_semantics=("parallel", "parallel"),
            vmem_limit_bytes=int(vmem_cap * 0.7)),
        cost_estimate=pl.CostEstimate(
            flops=matmul_flops + vpu_flops,
            transcendentals=0,
            bytes_accessed=itemsize * (N * C * H * W + out_elems)),
    )(x)
    return x1, x2, x3, x4


# ---------------------------------------------------------------------------
# Pure-JAX reference (PyTorch MaxPool2d semantics: -inf padding, floor mode).
# ---------------------------------------------------------------------------
def _reference(x):
    def mp(v, pad):
        return jax.lax.reduce_window(
            v, -jnp.inf, jax.lax.max,
            window_dimensions=(1, 1, 2, 2),
            window_strides=(1, 1, 2, 2),
            padding=((0, 0), (0, 0), (pad, pad), (pad, pad)))

    v = mp(mp(x, 0), 0)
    x1 = mp(v, 1)
    x2 = mp(x1, 0)
    x3 = mp(x2, 1)
    x4 = mp(x3, 0)
    return x1, x2, x3, x4


if __name__ == "__main__":
    # Spatial 64 (not 16): the module downsamples by 4 and then four more times;
    # smaller inputs would make ds4's output empty in the PyTorch module too.
    N, C, H, W = 2, 4, 64, 64
    x = jax.random.normal(jax.random.PRNGKey(0), (N, C, H, W), dtype=jnp.float32)

    outs = jax.block_until_ready(iter_downsample_forward(x))
    refs = _reference(x)
    for got, want in zip(outs, refs):
        np.testing.assert_allclose(np.asarray(got), np.asarray(want), rtol=1e-5, atol=1e-5)

    assert outs[0].shape == (N, C, 9, 9)
    assert outs[1].shape == (N, C, 4, 4)
    assert outs[2].shape == (N, C, 3, 3)
    assert outs[3].shape == (N, C, 1, 1)
    print("KERNEL_OK")
</pallas_src>

<mosaic_0001>
module attributes {stable_mosaic.version = 11 : i64} {
  func.func @kernel(%arg0: i32, %arg1: i32, %arg2: memref<1x4x64x64xf32, #tpu.memory_space<vmem>>, %arg3: memref<1x4x9x9xf32, #tpu.memory_space<vmem>>, %arg4: memref<1x4x4x4xf32, #tpu.memory_space<vmem>>, %arg5: memref<1x4x3x3xf32, #tpu.memory_space<vmem>>, %arg6: memref<1x4x1x1xf32, #tpu.memory_space<vmem>>, %arg7: memref<4x16x16xf32, #tpu.memory_space<vmem>>) attributes {dimension_semantics = [#tpu.dimension_semantics<parallel>, #tpu.dimension_semantics<parallel>], iteration_bounds = array<i64: 2, 1>, scalar_prefetch = 0 : i64, scratch_operands = 1 : i64, tpu.core_type = #tpu.core_type<tc>, window_params = [{transform_indices = @transform_0, window_bounds = array<i64: 1, 4, 64, 64>}, {transform_indices = @transform_1, window_bounds = array<i64: 1, 4, 9, 9>}, {transform_indices = @transform_2, window_bounds = array<i64: 1, 4, 4, 4>}, {transform_indices = @transform_3, window_bounds = array<i64: 1, 4, 3, 3>}, {transform_indices = @transform_4, window_bounds = array<i64: 1, 4, 1, 1>}]} {
    %c0 = arith.constant 0 : index
    %c0_0 = arith.constant 0 : index
    %c0_1 = arith.constant 0 : index
    %c0_2 = arith.constant 0 : index
    %0 = tpu.strided_load %arg2[%c0, %c0_0, %c0_1, %c0_2] {strides = array<i32: 1, 1, 4, 1>} : memref<1x4x64x64xf32, #tpu.memory_space<vmem>>, vector<1x4x16x64xf32>
    %1 = vector.shape_cast %0 : vector<1x4x16x64xf32> to vector<4x16x64xf32>
    %c0_3 = arith.constant 0 : index
    %c0_4 = arith.constant 0 : index
    %c1 = arith.constant 1 : index
    %c0_5 = arith.constant 0 : index
    %2 = tpu.strided_load %arg2[%c0_3, %c0_4, %c1, %c0_5] {strides = array<i32: 1, 1, 4, 1>} : memref<1x4x64x64xf32, #tpu.memory_space<vmem>>, vector<1x4x16x64xf32>
    %3 = vector.shape_cast %2 : vector<1x4x16x64xf32> to vector<4x16x64xf32>
    %4 = arith.maximumf %1, %3 : vector<4x16x64xf32>
    %c0_6 = arith.constant 0 : index
    %c0_7 = arith.constant 0 : index
    %c2 = arith.constant 2 : index
    %c0_8 = arith.constant 0 : index
    %5 = tpu.strided_load %arg2[%c0_6, %c0_7, %c2, %c0_8] {strides = array<i32: 1, 1, 4, 1>} : memref<1x4x64x64xf32, #tpu.memory_space<vmem>>, vector<1x4x16x64xf32>
    %6 = vector.shape_cast %5 : vector<1x4x16x64xf32> to vector<4x16x64xf32>
    %7 = arith.maximumf %4, %6 : vector<4x16x64xf32>
    %c0_9 = arith.constant 0 : index
    %c0_10 = arith.constant 0 : index
    %c3 = arith.constant 3 : index
    %c0_11 = arith.constant 0 : index
    %8 = tpu.strided_load %arg2[%c0_9, %c0_10, %c3, %c0_11] {strides = array<i32: 1, 1, 4, 1>} : memref<1x4x64x64xf32, #tpu.memory_space<vmem>>, vector<1x4x16x64xf32>
    %9 = vector.shape_cast %8 : vector<1x4x16x64xf32> to vector<4x16x64xf32>
    %10 = arith.maximumf %7, %9 : vector<4x16x64xf32>
    %11 = vector.extract_strided_slice %10 {offsets = [0, 0, 1], sizes = [4, 16, 63], strides = [1, 1, 1]} : vector<4x16x64xf32> to vector<4x16x63xf32>
    %12 = vector.extract_strided_slice %10 {offsets = [0, 0, 63], sizes = [4, 16, 1], strides = [1, 1, 1]} : vector<4x16x64xf32> to vector<4x16x1xf32>
    %13 = tpu.concatenate %11, %12 in 2 : vector<4x16x63xf32>, vector<4x16x1xf32> -> vector<4x16x64xf32>
    %14 = arith.maximumf %10, %13 : vector<4x16x64xf32>
    %15 = vector.extract_strided_slice %14 {offsets = [0, 0, 2], sizes = [4, 16, 62], strides = [1, 1, 1]} : vector<4x16x64xf32> to vector<4x16x62xf32>
    %16 = vector.extract_strided_slice %14 {offsets = [0, 0, 62], sizes = [4, 16, 2], strides = [1, 1, 1]} : vector<4x16x64xf32> to vector<4x16x2xf32>
    %17 = tpu.concatenate %15, %16 in 2 : vector<4x16x62xf32>, vector<4x16x2xf32> -> vector<4x16x64xf32>
    %18 = arith.maximumf %14, %17 : vector<4x16x64xf32>
    %19 = tpu.iota {dimensions = array<i32: 0>} : vector<64x16xi32>
    %20 = tpu.iota {dimensions = array<i32: 1>} : vector<64x16xi32>
    %c4_i32 = arith.constant 4 : i32
    %21 = vector.broadcast %c4_i32 : i32 to vector<64x16xi32>
    %22 = arith.muli %21, %20 : vector<64x16xi32>
    %23 = arith.cmpi eq, %19, %22 : vector<64x16xi32>
    %24 = arith.extui %23 : vector<64x16xi1> to vector<64x16xi32>
    %25 = arith.sitofp %24 : vector<64x16xi32> to vector<64x16xf32>
    %26 = vector.shape_cast %18 : vector<4x16x64xf32> to vector<64x64xf32>
    %cst = arith.constant dense<0.000000e+00> : vector<64x16xf32>
    %27 = tpu.matmul %26, %25, %cst {dimension_numbers = #tpu.dot_dimension_numbers<[1], [0], [0], [1], [0, 0, 1, 1], [], []>, precision = #tpu.contract_precision<fp32>} : vector<64x64xf32>, vector<64x16xf32>, vector<64x16xf32> -> vector<64x16xf32>
    %28 = vector.shape_cast %27 : vector<64x16xf32> to vector<4x16x16xf32>
    %c0_12 = arith.constant 0 : index
    %c0_13 = arith.constant 0 : index
    %c0_14 = arith.constant 0 : index
    %29 = vector.load %arg7[%c0_12, %c0_13, %c0_14] : memref<4x16x16xf32, #tpu.memory_space<vmem>>, vector<4x16x16xf32>
    tpu.vector_store %arg7[%c0_12, %c0_13, %c0_14], %28 {strides = array<i32>} : memref<4x16x16xf32, #tpu.memory_space<vmem>>, vector<4x16x16xf32>,
    %c0_15 = arith.constant 0 : index
    %c0_16 = arith.constant 0 : index
    %c0_17 = arith.constant 0 : index
    %30 = vector.load %arg7[%c0_15, %c0_16, %c0_17] : memref<4x16x16xf32, #tpu.memory_space<vmem>>, vector<4x1x16xf32>
    %c0_18 = arith.constant 0 : index
    %c1_19 = arith.constant 1 : index
    %c0_20 = arith.constant 0 : index
    %31 = tpu.strided_load %arg7[%c0_18, %c1_19, %c0_20] {strides = array<i32: 1, 2, 1>} : memref<4x16x16xf32, #tpu.memory_space<vmem>>, vector<4x8x16xf32>
    %c0_21 = arith.constant 0 : index
    %c2_22 = arith.constant 2 : index
    %c0_23 = arith.constant 0 : index
    %32 = tpu.strided_load %arg7[%c0_21, %c2_22, %c0_23] {strides = array<i32: 1, 2, 1>} : memref<4x16x16xf32, #tpu.memory_space<vmem>>, vector<4x7x16xf32>
    %33 = vector.extract_strided_slice %31 {offsets = [0, 0, 0], sizes = [4, 7, 16], strides = [1, 1, 1]} : vector<4x8x16xf32> to vector<4x7x16xf32>
    %34 = arith.maximumf %33, %32 : vector<4x7x16xf32>
    %35 = vector.extract_strided_slice %31 {offsets = [0, 7, 0], sizes = [4, 1, 16], strides = [1, 1, 1]} : vector<4x8x16xf32> to vector<4x1x16xf32>
    %36 = tpu.concatenate %34, %35 in 1 : vector<4x7x16xf32>, vector<4x1x16xf32> -> vector<4x8x16xf32>
    %37 = tpu.concatenate %30, %36 in 1 : vector<4x1x16xf32>, vector<4x8x16xf32> -> vector<4x9x16xf32>
    %38 = vector.extract_strided_slice %37 {offsets = [0, 0, 0], sizes = [4, 9, 1], strides = [1, 1, 1]} : vector<4x9x16xf32> to vector<4x9x1xf32>
    %39 = vector.extract_strided_slice %37 {offsets = [0, 0, 0], sizes = [4, 9, 15], strides = [1, 1, 1]} : vector<4x9x16xf32> to vector<4x9x15xf32>
    %40 = tpu.concatenate %38, %39 in 2 : vector<4x9x1xf32>, vector<4x9x15xf32> -> vector<4x9x16xf32>
    %41 = arith.maximumf %37, %40 : vector<4x9x16xf32>
    %42 = tpu.iota {dimensions = array<i32: 2>} : vector<4x9x16xi32>
    %c15_i32 = arith.constant 15 : i32
    %43 = vector.broadcast %c15_i32 : i32 to vector<4x9x16xi32>
    %44 = arith.cmpi eq, %42, %43 : vector<4x9x16xi32>
    %45 = arith.select %44, %37, %41 : vector<4x9x16xi1>, vector<4x9x16xf32>
    %46 = tpu.iota {dimensions = array<i32: 0>} : vector<16x9xi32>
    %47 = tpu.iota {dimensions = array<i32: 1>} : vector<16x9xi32>
    %c2_i32 = arith.constant 2 : i32
    %48 = vector.broadcast %c2_i32 : i32 to vector<16x9xi32>
    %49 = arith.muli %48, %47 : vector<16x9xi32>
    %c15_i32_24 = arith.constant 15 : i32
    %50 = vector.broadcast %c15_i32_24 : i32 to vector<16x9xi32>
    %51 = arith.minsi %49, %50 : vector<16x9xi32>
    %52 = arith.cmpi eq, %46, %51 : vector<16x9xi32>
    %53 = arith.extui %52 : vector<16x9xi1> to vector<16x9xi32>
    %54 = arith.sitofp %53 : vector<16x9xi32> to vector<16x9xf32>
    %55 = vector.shape_cast %45 : vector<4x9x16xf32> to vector<36x16xf32>
    %cst_25 = arith.constant dense<0.000000e+00> : vector<36x9xf32>
    %56 = tpu.matmul %55, %54, %cst_25 {dimension_numbers = #tpu.dot_dimension_numbers<[1], [0], [0], [1], [0, 0, 1, 1], [], []>, precision = #tpu.contract_precision<fp32>} : vector<36x16xf32>, vector<16x9xf32>, vector<36x9xf32> -> vector<36x9xf32>
    %57 = vector.shape_cast %56 : vector<36x9xf32> to vector<4x9x9xf32>
    %c0_26 = arith.constant 0 : index
    %c0_27 = arith.constant 0 : index
    %c0_28 = arith.constant 0 : index
    %c0_29 = arith.constant 0 : index
    %58 = vector.load %arg3[%c0_26, %c0_27, %c0_28, %c0_29] : memref<1x4x9x9xf32, #tpu.memory_space<vmem>>, vector<1x4x9x9xf32>
    %59 = vector.shape_cast %58 : vector<1x4x9x9xf32> to vector<4x9x9xf32>
    %60 = vector.shape_cast %57 : vector<4x9x9xf32> to vector<1x4x9x9xf32>
    tpu.vector_store %arg3[%c0_26, %c0_27, %c0_28, %c0_29], %60 {strides = array<i32>} : memref<1x4x9x9xf32, #tpu.memory_space<vmem>>, vector<1x4x9x9xf32>,
    %c0_30 = arith.constant 0 : index
    %c0_31 = arith.constant 0 : index
    %c0_32 = arith.constant 0 : index
    %c0_33 = arith.constant 0 : index
    %61 = tpu.strided_load %arg3[%c0_30, %c0_31, %c0_32, %c0_33] {strides = array<i32: 1, 1, 2, 1>} : memref<1x4x9x9xf32, #tpu.memory_space<vmem>>, vector<1x4x4x9xf32>
    %62 = vector.shape_cast %61 : vector<1x4x4x9xf32> to vector<4x4x9xf32>
    %c0_34 = arith.constant 0 : index
    %c0_35 = arith.constant 0 : index
    %c1_36 = arith.constant 1 : index
    %c0_37 = arith.constant 0 : index
    %63 = tpu.strided_load %arg3[%c0_34, %c0_35, %c1_36, %c0_37] {strides = array<i32: 1, 1, 2, 1>} : memref<1x4x9x9xf32, #tpu.memory_space<vmem>>, vector<1x4x4x9xf32>
    %64 = vector.shape_cast %63 : vector<1x4x4x9xf32> to vector<4x4x9xf32>
    %65 = arith.maximumf %62, %64 : vector<4x4x9xf32>
    %66 = vector.extract_strided_slice %65 {offsets = [0, 0, 1], sizes = [4, 4, 8], strides = [1, 1, 1]} : vector<4x4x9xf32> to vector<4x4x8xf32>
    %67 = vector.extract_strided_slice %65 {offsets = [0, 0, 8], sizes = [4, 4, 1], strides = [1, 1, 1]} : vector<4x4x9xf32> to vector<4x4x1xf32>
    %68 = tpu.concatenate %66, %67 in 2 : vector<4x4x8xf32>, vector<4x4x1xf32> -> vector<4x4x9xf32>
    %69 = arith.maximumf %65, %68 : vector<4x4x9xf32>
    %70 = tpu.iota {dimensions = array<i32: 0>} : vector<9x4xi32>
    %71 = tpu.iota {dimensions = array<i32: 1>} : vector<9x4xi32>
    %c2_i32_38 = arith.constant 2 : i32
    %72 = vector.broadcast %c2_i32_38 : i32 to vector<9x4xi32>
    %73 = arith.muli %72, %71 : vector<9x4xi32>
    %74 = arith.cmpi eq, %70, %73 : vector<9x4xi32>
    %75 = arith.extui %74 : vector<9x4xi1> to vector<9x4xi32>
    %76 = arith.sitofp %75 : vector<9x4xi32> to vector<9x4xf32>
    %77 = vector.shape_cast %69 : vector<4x4x9xf32> to vector<16x9xf32>
    %cst_39 = arith.constant dense<0.000000e+00> : vector<16x4xf32>
    %78 = tpu.matmul %77, %76, %cst_39 {dimension_numbers = #tpu.dot_dimension_numbers<[1], [0], [0], [1], [0, 0, 1, 1], [], []>, precision = #tpu.contract_precision<fp32>} : vector<16x9xf32>, vector<9x4xf32>, vector<16x4xf32> -> vector<16x4xf32>
    %79 = vector.shape_cast %78 : vector<16x4xf32> to vector<4x4x4xf32>
    %c0_40 = arith.constant 0 : index
    %c0_41 = arith.constant 0 : index
    %c0_42 = arith.constant 0 : index
    %c0_43 = arith.constant 0 : index
    %80 = vector.load %arg4[%c0_40, %c0_41, %c0_42, %c0_43] : memref<1x4x4x4xf32, #tpu.memory_space<vmem>>, vector<1x4x4x4xf32>
    %81 = vector.shape_cast %80 : vector<1x4x4x4xf32> to vector<4x4x4xf32>
    %82 = vector.shape_cast %79 : vector<4x4x4xf32> to vector<1x4x4x4xf32>
    tpu.vector_store %arg4[%c0_40, %c0_41, %c0_42, %c0_43], %82 {strides = array<i32>} : memref<1x4x4x4xf32, #tpu.memory_space<vmem>>, vector<1x4x4x4xf32>,
    %c0_44 = arith.constant 0 : index
    %c0_45 = arith.constant 0 : index
    %c0_46 = arith.constant 0 : index
    %c0_47 = arith.constant 0 : index
    %83 = vector.load %arg4[%c0_44, %c0_45, %c0_46, %c0_47] : memref<1x4x4x4xf32, #tpu.memory_space<vmem>>, vector<1x4x1x4xf32>
    %84 = vector.shape_cast %83 : vector<1x4x1x4xf32> to vector<4x1x4xf32>
    %c0_48 = arith.constant 0 : index
    %c0_49 = arith.constant 0 : index
    %c1_50 = arith.constant 1 : index
    %c0_51 = arith.constant 0 : index
    %85 = tpu.strided_load %arg4[%c0_48, %c0_49, %c1_50, %c0_51] {strides = array<i32: 1, 1, 2, 1>} : memref<1x4x4x4xf32, #tpu.memory_space<vmem>>, vector<1x4x2x4xf32>
    %86 = vector.shape_cast %85 : vector<1x4x2x4xf32> to vector<4x2x4xf32>
    %c0_52 = arith.constant 0 : index
    %c0_53 = arith.constant 0 : index
    %c2_54 = arith.constant 2 : index
    %c0_55 = arith.constant 0 : index
    %87 = tpu.strided_load %arg4[%c0_52, %c0_53, %c2_54, %c0_55] {strides = array<i32: 1, 1, 2, 1>} : memref<1x4x4x4xf32, #tpu.memory_space<vmem>>, vector<1x4x1x4xf32>
    %88 = vector.shape_cast %87 : vector<1x4x1x4xf32> to vector<4x1x4xf32>
    %89 = vector.extract_strided_slice %86 {offsets = [0, 0, 0], sizes = [4, 1, 4], strides = [1, 1, 1]} : vector<4x2x4xf32> to vector<4x1x4xf32>
    %90 = arith.maximumf %89, %88 : vector<4x1x4xf32>
    %91 = vector.extract_strided_slice %86 {offsets = [0, 1, 0], sizes = [4, 1, 4], strides = [1, 1, 1]} : vector<4x2x4xf32> to vector<4x1x4xf32>
    %92 = tpu.concatenate %90, %91 in 1 : vector<4x1x4xf32>, vector<4x1x4xf32> -> vector<4x2x4xf32>
    %93 = tpu.concatenate %84, %92 in 1 : vector<4x1x4xf32>, vector<4x2x4xf32> -> vector<4x3x4xf32>
    %94 = vector.extract_strided_slice %93 {offsets = [0, 0, 0], sizes = [4, 3, 1], strides = [1, 1, 1]} : vector<4x3x4xf32> to vector<4x3x1xf32>
    %95 = vector.extract_strided_slice %93 {offsets = [0, 0, 0], sizes = [4, 3, 3], strides = [1, 1, 1]} : vector<4x3x4xf32> to vector<4x3x3xf32>
    %96 = tpu.concatenate %94, %95 in 2 : vector<4x3x1xf32>, vector<4x3x3xf32> -> vector<4x3x4xf32>
    %97 = arith.maximumf %93, %96 : vector<4x3x4xf32>
    %98 = tpu.iota {dimensions = array<i32: 2>} : vector<4x3x4xi32>
    %c3_i32 = arith.constant 3 : i32
    %99 = vector.broadcast %c3_i32 : i32 to vector<4x3x4xi32>
    %100 = arith.cmpi eq, %98, %99 : vector<4x3x4xi32>
    %101 = arith.select %100, %93, %97 : vector<4x3x4xi1>, vector<4x3x4xf32>
    %102 = tpu.iota {dimensions = array<i32: 0>} : vector<4x3xi32>
    %103 = tpu.iota {dimensions = array<i32: 1>} : vector<4x3xi32>
    %c2_i32_56 = arith.constant 2 : i32
    %104 = vector.broadcast %c2_i32_56 : i32 to vector<4x3xi32>
    %105 = arith.muli %104, %103 : vector<4x3xi32>
    %c3_i32_57 = arith.constant 3 : i32
    %106 = vector.broadcast %c3_i32_57 : i32 to vector<4x3xi32>
    %107 = arith.minsi %105, %106 : vector<4x3xi32>
    %108 = arith.cmpi eq, %102, %107 : vector<4x3xi32>
    %109 = arith.extui %108 : vector<4x3xi1> to vector<4x3xi32>
    %110 = arith.sitofp %109 : vector<4x3xi32> to vector<4x3xf32>
    %111 = vector.shape_cast %101 : vector<4x3x4xf32> to vector<12x4xf32>
    %cst_58 = arith.constant dense<0.000000e+00> : vector<12x3xf32>
    %112 = tpu.matmul %111, %110, %cst_58 {dimension_numbers = #tpu.dot_dimension_numbers<[1], [0], [0], [1], [0, 0, 1, 1], [], []>, precision = #tpu.contract_precision<fp32>} : vector<12x4xf32>, vector<4x3xf32>, vector<12x3xf32> -> vector<12x3xf32>
    %113 = vector.shape_cast %112 : vector<12x3xf32> to vector<4x3x3xf32>
    %c0_59 = arith.constant 0 : index
    %c0_60 = arith.constant 0 : index
    %c0_61 = arith.constant 0 : index
    %c0_62 = arith.constant 0 : index
    %114 = vector.load %arg5[%c0_59, %c0_60, %c0_61, %c0_62] : memref<1x4x3x3xf32, #tpu.memory_space<vmem>>, vector<1x4x3x3xf32>
    %115 = vector.shape_cast %114 : vector<1x4x3x3xf32> to vector<4x3x3xf32>
    %116 = vector.shape_cast %113 : vector<4x3x3xf32> to vector<1x4x3x3xf32>
    tpu.vector_store %arg5[%c0_59, %c0_60, %c0_61, %c0_62], %116 {strides = array<i32>} : memref<1x4x3x3xf32, #tpu.memory_space<vmem>>, vector<1x4x3x3xf32>,
    %c0_63 = arith.constant 0 : index
    %c0_64 = arith.constant 0 : index
    %c0_65 = arith.constant 0 : index
    %c0_66 = arith.constant 0 : index
    %117 = tpu.strided_load %arg5[%c0_63, %c0_64, %c0_65, %c0_66] {strides = array<i32: 1, 1, 2, 1>} : memref<1x4x3x3xf32, #tpu.memory_space<vmem>>, vector<1x4x1x3xf32>
    %118 = vector.shape_cast %117 : vector<1x4x1x3xf32> to vector<4x1x3xf32>
    %c0_67 = arith.constant 0 : index
    %c0_68 = arith.constant 0 : index
    %c1_69 = arith.constant 1 : index
    %c0_70 = arith.constant 0 : index
    %119 = tpu.strided_load %arg5[%c0_67, %c0_68, %c1_69, %c0_70] {strides = array<i32: 1, 1, 2, 1>} : memref<1x4x3x3xf32, #tpu.memory_space<vmem>>, vector<1x4x1x3xf32>
    %120 = vector.shape_cast %119 : vector<1x4x1x3xf32> to vector<4x1x3xf32>
    %121 = arith.maximumf %118, %120 : vector<4x1x3xf32>
    %122 = vector.extract_strided_slice %121 {offsets = [0, 0, 1], sizes = [4, 1, 2], strides = [1, 1, 1]} : vector<4x1x3xf32> to vector<4x1x2xf32>
    %123 = vector.extract_strided_slice %121 {offsets = [0, 0, 2], sizes = [4, 1, 1], strides = [1, 1, 1]} : vector<4x1x3xf32> to vector<4x1x1xf32>
    %124 = tpu.concatenate %122, %123 in 2 : vector<4x1x2xf32>, vector<4x1x1xf32> -> vector<4x1x3xf32>
    %125 = arith.maximumf %121, %124 : vector<4x1x3xf32>
    %126 = tpu.iota {dimensions = array<i32: 0>} : vector<3x1xi32>
    %127 = tpu.iota {dimensions = array<i32: 1>} : vector<3x1xi32>
    %c2_i32_71 = arith.constant 2 : i32
    %128 = vector.broadcast %c2_i32_71 : i32 to vector<3x1xi32>
    %129 = arith.muli %128, %127 : vector<3x1xi32>
    %130 = arith.cmpi eq, %126, %129 : vector<3x1xi32>
    %131 = arith.extui %130 : vector<3x1xi1> to vector<3x1xi32>
    %132 = arith.sitofp %131 : vector<3x1xi32> to vector<3x1xf32>
    %133 = vector.shape_cast %125 : vector<4x1x3xf32> to vector<4x3xf32>
    %cst_72 = arith.constant dense<0.000000e+00> : vector<4x1xf32>
    %134 = tpu.matmul %133, %132, %cst_72 {dimension_numbers = #tpu.dot_dimension_numbers<[1], [0], [0], [1], [0, 0, 1, 1], [], []>, precision = #tpu.contract_precision<fp32>} : vector<4x3xf32>, vector<3x1xf32>, vector<4x1xf32> -> vector<4x1xf32>
    %135 = vector.shape_cast %134 : vector<4x1xf32> to vector<4x1x1xf32>
    %c0_73 = arith.constant 0 : index
    %c0_74 = arith.constant 0 : index
    %c0_75 = arith.constant 0 : index
    %c0_76 = arith.constant 0 : index
    %136 = vector.load %arg6[%c0_73, %c0_74, %c0_75, %c0_76] : memref<1x4x1x1xf32, #tpu.memory_space<vmem>>, vector<1x4x1x1xf32>
    %137 = vector.shape_cast %136 : vector<1x4x1x1xf32> to vector<4x1x1xf32>
    %138 = vector.shape_cast %135 : vector<4x1x1xf32> to vector<1x4x1x1xf32>
    tpu.vector_store %arg6[%c0_73, %c0_74, %c0_75, %c0_76], %138 {strides = array<i32>} : memref<1x4x1x1xf32, #tpu.memory_space<vmem>>, vector<1x4x1x1xf32>,
    return
  }
  func.func @transform_0(%arg0: i32, %arg1: i32) -> (i32, i32, i32, i32) {
    %c0_i32 = arith.constant 0 : i32
    %c0_i32_0 = arith.constant 0 : i32
    %c0_i32_1 = arith.constant 0 : i32
    return %arg0, %arg1, %c0_i32, %c0_i32_0 : i32, i32, i32, i32
  }
  func.func @transform_1(%arg0: i32, %arg1: i32) -> (i32, i32, i32, i32) {
    %c0_i32 = arith.constant 0 : i32
    %c0_i32_0 = arith.constant 0 : i32
    %c0_i32_1 = arith.constant 0 : i32
    return %arg0, %arg1, %c0_i32, %c0_i32_0 : i32, i32, i32, i32
  }
  func.func @transform_2(%arg0: i32, %arg1: i32) -> (i32, i32, i32, i32) {
    %c0_i32 = arith.constant 0 : i32
    %c0_i32_0 = arith.constant 0 : i32
    %c0_i32_1 = arith.constant 0 : i32
    return %arg0, %arg1, %c0_i32, %c0_i32_0 : i32, i32, i32, i32
  }
  func.func @transform_3(%arg0: i32, %arg1: i32) -> (i32, i32, i32, i32) {
    %c0_i32 = arith.constant 0 : i32
    %c0_i32_0 = arith.constant 0 : i32
    %c0_i32_1 = arith.constant 0 : i32
    return %arg0, %arg1, %c0_i32, %c0_i32_0 : i32, i32, i32, i32
  }
  func.func @transform_4(%arg0: i32, %arg1: i32) -> (i32, i32, i32, i32) {
    %c0_i32 = arith.constant 0 : i32
    %c0_i32_0 = arith.constant 0 : i32
    %c0_i32_1 = arith.constant 0 : i32
    return %arg0, %arg1, %c0_i32, %c0_i32_0 : i32, i32, i32, i32
  }
}

</mosaic_0001>

<bundles_post_ra>
// kernel: tpu_custom_call.1
= control target key start
LH: loop header
LB: loop body
LE: loop exit
PB: predicated region body
PF: predicated region fallthrough
CT: control target
= control target key end

     0   :  { %10 = vsyncpa [#allocation4], 0  ;;  %s7927_s0 = inlined_call_operand.hbm [shape: f32[2,4,64,64], index: 0, kind: input, shape index: {}]   ;;  %s7928_s1 = inlined_call_operand.vmem [shape: f32[2,4,9,9], index: 1, kind: output, shape index: {0}]   ;;  %s7929_s2 = inlined_call_operand.hbm [shape: f32[2,4,4,4], index: 2, kind: output, shape index: {1}]   ;;  %s7930_s3 = inlined_call_operand.vmem [shape: f32[2,4,3,3], index: 3, kind: output, shape index: {2}]   ;;  %s7931_s4 = inlined_call_operand.vmem [shape: f32[2,4,1,1], index: 4, kind: output, shape index: {3}]  }
   0x1   :  { %12 = vsyncpa [#allocation4 + $0x1], 0 }
   0x2   :  { %13 = vsyncpa [#allocation5], 0 }
   0x3   :  { %15 = vsyncpa [#allocation5 + $0x1], 0  ;;  %s6629_s15 = smov 0   ;;  %s6631_s16 = smov 0  }
   0x4   :  { %s6633_s17 = smov 0   ;;  %s6635_s18 = smov 0  }
   0x5   :  { %s6637_s19 = smov 0   ;;  %s6639_s20 = smov 0  }
   0x6 LB: > { %s5419_s21 = sadd.s32 4294967295, %s6587_s20   ;;  %s5420_s22 = sadd.s32 4294967294, %s6587_s20   ;;  %s6587_s20 = sphi %s6639_s20, %s21_s20   ;;  %s6583_s19 = sphi %s6637_s19, %s7958_s19   ;;  %s6579_s18 = sphi %s6635_s18, %s7957_s18   ;;  %s6575_s17 = sphi %s6633_s17, %s7956_s17   ;;  %s6571_s16 = sphi %s6631_s16, %s7955_s16   ;;  %s6567_s15 = sphi %s6629_s15, %s7954_s15  }
   0x7   : > { %s33_s23 = sadd.s32 1, %s6583_s19  ;;  %s42_s24 = sadd.s32 1, %s6575_s17 }
   0x8   : > { %p35_p0 = scmp.ge.s32.totalorder %s33_s23, 2  ;;  %p49_p1 = scmp.ne.s32.totalorder %s6575_s17, %s6571_s16 }
   0x9   : > { %p50_p2 = scmp.eq.s32.totalorder %s6587_s20, 0  ;;  %p55_p3 = scmp.ne.s32.totalorder %s6571_s16, %s6567_s15 }
   0xa   : > { %s7960_s23 = smov (%p35_p0, %s33_s23), 0  ;;  %p56_p5 = scmp.eq.s32.totalorder %s5419_s21, 0 }
   0xb   : > { %p6670_p4 = por %p50_p2, %p49_p1  ;;  %s37_s26 = ssub.s32 %s6583_s19, %s7960_s23 }
   0xc   : > { %p109_p6 = scmp.eq.s32.totalorder %s5419_s21, 1  ;;  %p40_p7 = scmp.eq.s32.totalorder %s37_s26, 0 }
   0xd   : > { %p6676_p8 = por %p56_p5, %p55_p3  ;;  %p115_p10 = scmp.eq.s32.totalorder %s5420_s22, 1 }
   0xe   : > { %p6680_p9 = por %p109_p6, %p49_p1  ;;  %p6412_p13 = scmp.lt.s32.totalorder %s6587_s20, 2 }
   0xf   : > { %s6685_s29 = scalar_select %p40_p7, %s6575_s17, %s42_s24  }
  0x10   : > { %s7935_s28 = scalar_select %p6680_p9, 1, 0 }
  0x11   : > { %p6687_p11 = por %p115_p10, %p55_p3  ;;  %s191_s5 = sand.u32 1, %s6575_s17  }
  0x12   : > { %s5423_s6 = sshll.u32 %s191_s5, 8  ;;  %s5556_s7 = sshll.u32 %s6583_s19, 12 }
  0x13   : > { %s7936_s30 = scalar_select %p6687_p11, 1, 0 }
  0x14   : > { %s6698_s10 = scalar_lea.hbm %s7927_s0, %s5556_s7  ;;  %s195_s11 = scalar_lea.vmem [#allocation3], %s5423_s6 }
  0x15   : > { %s205_s12 = sshll.u32 %s195_s11, 4  ;;  %p6704_p0 = pnand %p6412_p13, %p6670_p4  ;;  %s6700_s12 = int_to_ptr.vmem [resolvable:$true] %s205_s12 }
  0x16   : > { %s6709_s14 = scalar_lea.sflag [#allocation4], %s191_s5  ;;  %s6475_s21 = scalar_lea.hbm %s6698_s10, 4096 }
  0x17   : > { %p6476_p2 = scmp.ne.s32.totalorder %s6698_s10, %s6475_s21  ;;  %p6477_p3 = pneg %p6704_p0 }
  0x18   : > { %s6480_s25 = scalar_lea.hbm %s7927_s0, 8192  ;;  %p6481_p4 = scmp.lt.u32.totalorder %s6698_s10, %s7927_s0 }
  0x19   : > { %p6478_p5 = pnand %p6477_p3, %p6476_p2  ;;  %p6482_p7 = scmp.lt.u32.totalorder %s6480_s25, %s6475_s21 }
  0x1a   : > { %p6484_p13 = scmp.lt.u32.totalorder %s6475_s21, %s6698_s10 }
  0x1b   : > { %p6479_p6 = pneg %p6478_p5  ;;  %p6483_p10 = por %p6482_p7, %p6481_p4 }
  0x1d   : > { %p6485_p12 = por %p6484_p13, %p6483_p10 }
  0x1f   : > { %p6486_p1 = pnand %p6485_p12, %p6479_p6 }
  0x21   : > { %6489 = shalt.err (!%p6486_p1)
}
  0x22   : > { %s6490_s5 = scalar_lea.vmem %s6700_s12, 4096  ;;  %s6589_s7 = smov [#allocation3]  }
  0x23   : > { %p6491_p2 = scmp.ne.s32.totalorder %s6700_s12, %s6490_s5  ;;  %s6495_s8 = sshll.u32 %s6589_s7, 4  ;;  %s6496_s8 = int_to_ptr.vmem [resolvable:$false] %s6495_s8 }
  0x24   : > { %s6497_s9 = scalar_lea.vmem %s6496_s8, 8192  ;;  %p6498_p9 = scmp.lt.s32.totalorder %s6700_s12, %s6496_s8 }
  0x25   : > { %p6493_p5 = pnand %p6491_p2, %p6477_p3  ;;  %p6499_p4 = scmp.lt.s32.totalorder %s6497_s9, %s6490_s5 }
  0x27   : > { %p6494_p11 = pneg %p6493_p5  ;;  %p6500_p7 = por %p6499_p4, %p6498_p9 }
  0x29   : > { %p6501_p10 = pnand %p6500_p7, %p6494_p11 }
  0x2b   : > { %6504 = shalt.err (!%p6501_p10)
}
  0x2c   : > { %s6590_s11 = smov 128   ;;  %s6591_s21 = smov 8  }
  0x2d   : > { %6407 = dma.hbm_to_vmem [thread:$0]  (!%p6704_p0), %s6698_s10, 4096, %s6700_s12, %s6709_s14, %s6590_s11, %s6590_s11, %s6591_s21  }
  0x2e   : > { %p213_p12 = scmp.lt.s32.totalorder %s6587_s20, 3  ;;  %p7938_p1 = scmp.ge.s32.totalorder %s6587_s20, 1 }
  0x30   : > { %p214_p3 = pnand %p7938_p1, %p213_p12 }
  0x31   : > { %s6741_s22 = sand.u32 (!%p214_p3), 1, %s6571_s16  }
  0x32   : > { %217 = sbr.rel (%p214_p3) target bundleno = 2362 (0x93a), region = 24  ;;  %s5427_s24 = sshll.u32 (!%p214_p3), %s6741_s22, 8 }
  0x33   : > { %s220_s25 = scalar_lea.sflag (!%p214_p3), [#allocation4], %s6741_s22  ;;  %s6745_s26 = scalar_lea.vmem (!%p214_p3), [#allocation3], %s5427_s24 }
  0x39   : > { %6558 = dma.done.wait (%p6676_p8), %s220_s25, 4096  }
  0x3a   : > { %6560 = vsyncadd (%p6676_p8), %s220_s25, 4294963200  ;;  %v307_v0 = vld [vmem:[%s6745_s26] ss:$4 sm:$0xff]  ;;  %v5441_v1 = vld [vmem:[%s6745_s26 + $0x1] ss:$4 sm:$0xff]  ;;  %s6592_s27 = smov 127   ;;  %v492_v56 = vlaneseq }
  0x3b   : > { %v5449_v2 = vld [vmem:[%s6745_s26 + $0x2] ss:$4 sm:$0xff]  ;;  %v338_v3 = vmax.f32 %v307_v0, %v5441_v1  ;;  %v5435_v4 = vld [vmem:[%s6745_s26 + $0x40] ss:$4 sm:$0xff]  ;;  %v5443_v5 = vld [vmem:[%s6745_s26 + $0x41] ss:$4 sm:$0xff] }
  0x3c   : > { %v5457_v6 = vld [vmem:[%s6745_s26 + $0x3] ss:$4 sm:$0xff]  ;;  %v340_v7 = vmax.f32 %v5435_v4, %v5443_v5  ;;  %v5451_v8 = vld [vmem:[%s6745_s26 + $0x42] ss:$4 sm:$0xff]  ;;  %v5434_v9 = vld [vmem:[%s6745_s26 + $0x20] ss:$4 sm:$0xff] }
  0x3d   : > { %v362_v10 = vmax.f32 %v338_v3, %v5449_v2  ;;  %v5459_v11 = vld [vmem:[%s6745_s26 + $0x43] ss:$4 sm:$0xff]  ;;  %v5442_v12 = vld [vmem:[%s6745_s26 + $0x21] ss:$4 sm:$0xff]  ;;  %v5450_v13 = vld [vmem:[%s6745_s26 + $0x22] ss:$4 sm:$0xff] }
  0x3e   : > { %v364_v14 = vmax.f32 %v340_v7, %v5451_v8  ;;  %v339_v15 = vmax.f32 %v5434_v9, %v5442_v12  ;;  %v5436_v16 = vld [vmem:[%s6745_s26 + $0x60] ss:$4 sm:$0xff]  ;;  %v5444_v17 = vld [vmem:[%s6745_s26 + $0x61] ss:$4 sm:$0xff]  ;;  %v5452_v18 = vld [vmem:[%s6745_s26 + $0x62] ss:$4 sm:$0xff] }
  0x3f   : > { %v6765_v19 = vmax.f32 %v362_v10, %v5457_v6  ;;  %v5458_v20 = vld [vmem:[%s6745_s26 + $0x23] ss:$4 sm:$0xff]  ;;  %v341_v21 = vmax.f32 %v5436_v16, %v5444_v17  ;;  %v5437_v22 = vld [vmem:[%s6745_s26 + $0x80] ss:$4 sm:$0xff]  ;;  %v5445_v23 = vld [vmem:[%s6745_s26 + $0x81] ss:$4 sm:$0xff] }
  0x40   : > { %v6770_v24 = vmax.f32 %v364_v14, %v5459_v11  ;;  %v363_v25 = vmax.f32 %v339_v15, %v5450_v13  ;;  %v5460_v26 = vld [vmem:[%s6745_s26 + $0x63] ss:$4 sm:$0xff]  ;;  %v342_v27 = vmax.f32 %v5437_v22, %v5445_v23  ;;  %v5453_v28 = vld [vmem:[%s6745_s26 + $0x82] ss:$4 sm:$0xff]  ;;  %v5438_v29 = vld [vmem:[%s6745_s26 + $0xa0] ss:$4 sm:$0xff] }
  0x41   : > { %402 = vrot.lane.b32.xlu0 %v6765_v19, %s6592_s27  ;;  %v365_v30 = vmax.f32 %v341_v21, %v5452_v18  ;;  %v5461_v31 = vld [vmem:[%s6745_s26 + $0x83] ss:$4 sm:$0xff]  ;;  %v5446_v32 = vld [vmem:[%s6745_s26 + $0xa1] ss:$4 sm:$0xff]  ;;  %v5454_v33 = vld [vmem:[%s6745_s26 + $0xa2] ss:$4 sm:$0xff] }
  0x42   : > { %406 = vrot.lane.b32.xlu1 %v6770_v24, %s6592_s27  ;;  %v6782_v34 = vmax.f32 %v363_v25, %v5458_v20  ;;  %v366_v35 = vmax.f32 %v342_v27, %v5453_v28  ;;  %v343_v36 = vmax.f32 %v5438_v29, %v5446_v32  ;;  %v5439_v37 = vld [vmem:[%s6745_s26 + $0xc0] ss:$4 sm:$0xff]  ;;  %v5447_v38 = vld [vmem:[%s6745_s26 + $0xc1] ss:$4 sm:$0xff]  ;;  %v5455_v39 = vld [vmem:[%s6745_s26 + $0xc2] ss:$4 sm:$0xff] }
  0x43   : > { %v6787_v40 = vmax.f32 %v365_v30, %v5460_v26  ;;  %v5462_v41 = vld [vmem:[%s6745_s26 + $0xa3] ss:$4 sm:$0xff]  ;;  %v344_v42 = vmax.f32 %v5439_v37, %v5447_v38  ;;  %v5440_v43 = vld [vmem:[%s6745_s26 + $0xe0] ss:$4 sm:$0xff]  ;;  %v5448_v44 = vld [vmem:[%s6745_s26 + $0xe1] ss:$4 sm:$0xff] }
  0x44   : > { %v367_v45 = vmax.f32 %v343_v36, %v5454_v33  ;;  %v345_v46 = vmax.f32 %v5440_v43, %v5448_v44  ;;  %v5456_v47 = vld [vmem:[%s6745_s26 + $0xe2] ss:$4 sm:$0xff]  ;;  %v6795_v48 = vmax.f32 %v366_v35, %v5461_v31  ;;  %v5463_v51 = vld [vmem:[%s6745_s26 + $0xc3] ss:$4 sm:$0xff]  ;;  %v6815_v57 = vshrl.u32 %v492_v56, 7  ;;  %s6595_s10 = smov 126  }
  0x45   : > { %404 = vrot.lane.b32.xlu0 %v6782_v34, %s6592_s27  ;;  %v368_v49 = vmax.f32 %v344_v42, %v5455_v39  ;;  %v5464_v53 = vld [vmem:[%s6745_s26 + $0xe3] ss:$4 sm:$0xff]  ;;  %v6817_v58 = vand.u32 127, %v492_v56  ;;  %v6593_v62 = vmov 1.0|1.0   ;;  %v6594_v1 = vmov 0.0  }
  0x46   : > { %408 = vrot.lane.b32.xlu1 %v6787_v40, %s6592_s27  ;;  %v6799_v50 = vmax.f32 %v367_v45, %v5462_v41  ;;  %v369_v52 = vmax.f32 %v345_v46, %v5456_v47  ;;  %v6820_v59 = vadd.s32 8, %v6815_v57  ;;  %v495_v63 = vadd.s32 16, %v6815_v57  ;;  %s6596_s12 = smov 1   ;;  %p277_p8 = scmp.lt.s32.totalorder %s6579_s18, 1 }
  0x47   : > { %v6805_v54 = vmax.f32 %v368_v49, %v5463_v51  ;;  %v6823_v60 = vmul.u32 4, %v6817_v58  ;;  %v496_v0 = vadd.s32 24, %v6815_v57  ;;  %v497_v5 = vadd.s32 32, %v6815_v57  ;;  %s5428_s8 = sshll.u32 %s6741_s22, 4  ;;  %s5559_s26 = sshll.u32 %s6579_s18, 8 }
  0x48   : > { %v6809_v55 = vmax.f32 %v369_v52, %v5464_v53  ;;  %v498_v6 = vadd.s32 40, %v6815_v57  ;;  %vm426_vm6 = vcmask 515072   ;;  %v499_v15 = vadd.s32 48, %v6815_v57  ;;  %s7571_s13 = scalar_select %p277_p8, %s6579_s18, 1 }
  0x49   : > { %410 = vrot.lane.b32.xlu0 %v6795_v48, %s6592_s27  ;;  %vm504_vm0 = vcmp.eq.s32.totalorder %v6815_v57, %v6823_v60  ;;  %vm505_vm1 = vcmp.eq.s32.totalorder %v6820_v59, %v6823_v60  ;;  %vm506_vm3 = vcmp.eq.s32.totalorder %v495_v63, %v6823_v60  ;;  %vm507_vm4 = vcmp.eq.s32.totalorder %v496_v0, %v6823_v60  ;;  %s7713_s9 = scalar_lea.vmem [#allocation6], %s5428_s8  ;;  %s5177_s6 = scalar_lea.sflag [#allocation5], %s6741_s22 }
  0x4a   : > { %412 = vrot.lane.b32.xlu1 %v6799_v50, %s6592_s27  ;;  %vm6829_vm2 = vmpackc.low %vm505_vm1, %vm504_vm0  ;;  %v5465_v2 = vsel %vm504_vm0, 1.0, %v6594_v1  ;;  %v5466_v4 = vsel %vm505_vm1, 1.0, %v6594_v1  ;;  %vm508_vm7 = vcmp.eq.s32.totalorder %v497_v5, %v6823_v60  ;;  %vm509_vm8 = vcmp.eq.s32.totalorder %v498_v6, %v6823_v60  ;;  %s5557_s14 = sshll.u32 %s7571_s13, 6  ;;  %s5558_s11 = sshll.u32 %s7571_s13, 4 }
  0x4b   : > { %6137 = vmatprep.subr.msk.bf16.mxu0 %vm6829_vm2, %v6593_v62  ;;  %vm6848_vm5 = vmpackc.low %vm507_vm4, %vm506_vm3  ;;  %v6861_v7 = vsub.f32 %v5465_v2, %v5465_v2  ;;  %v6865_v9 = vsub.f32 %v5466_v4, %v5466_v4  ;;  %v5467_v13 = vsel %vm506_vm3, 1.0, %v6594_v1  ;;  %v5468_v14 = vsel %vm507_vm4, 1.0, %v6594_v1  ;;  %s7591_s7 = scalar_lea.vmem %s7928_s1, %s5557_s14  ;;  %s296_s25 = scalar_lea.vmem %s7930_s3, %s5558_s11 }
  0x4c   : > { %6139 = vmatpush3.bf16.msk.msra.mxu0 %vm6829_vm2, %v6593_v62  ;;  %vm6871_vm9 = vmpackc.low %vm509_vm8, %vm508_vm7  ;;  %v6895_v18 = vsub.f32 %v5467_v13, %v5467_v13  ;;  %v500_v20 = vadd.s32 56, %v6815_v57  ;;  %vm510_vm10 = vcmp.eq.s32.totalorder %v499_v15, %v6823_v60  ;;  %v6905_v23 = vsub.f32 %v5468_v14, %v5468_v14  ;;  %s7869_s14 = scalar_lea.hbm %s7929_s2, %s5559_s26  ;;  %p7951_p11 = scmp.ne.s32.totalorder %s7935_s28, 0 }
  0x4d   : > { %414 = vrot.lane.b32.xlu0 %v6805_v54, %s6592_s27  ;;  %6141 = vmatprep.subr.msk.bf16.mxu0 %vm6848_vm5, %v6593_v62  ;;  %v709_v21 = vand.u32 4294901760, %v6861_v7  ;;  %v716_v25 = vand.u32 4294901760, %v6865_v9  ;;  %v5469_v28 = vsel %vm508_vm7, 1.0, %v6594_v1  ;;  %vm475_vm13 = vcmask 506880  }
  0x4e   : > { %416 = vrot.lane.b32.xlu1 %v6809_v55, %s6592_s27  ;;  %vm511_vm11 = vcmp.eq.s32.totalorder %v500_v20, %v6823_v60  ;;  %v736_v37 = vsub.f32 %v5469_v28, %v5469_v28  ;;  %v730_v39 = vand.u32 4294901760, %v6905_v23  ;;  %vm528_vm14 = vcmask 523264  }
  0x4f   : > { %vm6926_vm12 = vmpackc.low %vm511_vm11, %vm510_vm10  ;;  %v710_v32 = vsub.f32 %v6861_v7, %v709_v21  ;;  %v717_v33 = vsub.f32 %v6865_v9, %v716_v25  ;;  %v5472_v43 = vsel %vm511_vm11, 1.0, %v6594_v1  ;;  %vm1391_vm15 = vcmask 130048  }
  0x50   : > { %6143 = vmatpush3.bf16.msk.msra.mxu0 %vm6848_vm5, %v6593_v62  ;;  %v757_v49 = vsub.f32 %v5472_v43, %v5472_v43  ;;  %v731_v53 = vsub.f32 %v6905_v23, %v730_v39  ;;  %v737_v60 = vand.u32 4294901760, %v736_v37  ;;  %vm1424_vm0 = vcmask 1046528  }
  0x51   : > { %6145 = vmatprep.subr.msk.bf16.mxu0 %vm6871_vm9, %v6593_v62  ;;  %v711_v44 = vand.u32 4294901760, %v710_v32  ;;  %v718_v51 = vand.u32 4294901760, %v717_v33  ;;  %v7004_v32 = vpack.c.bf16 %v6905_v23, %v6895_v18  ;;  %vm1441_vm1 = vcmask 1040384  }
  0x52   : > { %v732_v6 = vand.u32 4294901760, %v731_v53  ;;  %v758_v15 = vand.u32 4294901760, %v757_v49  ;;  %vm1474_vm7 = vcmask 7168  }
  0x53   : > { %v6975_v4 = vpack.c.bf16 %v718_v51, %v711_v44 }
  0x54   : > { %6147 = vmatpush3.bf16.msk.msra.mxu0 %vm6871_vm9, %v6593_v62 }
  0x55   : > { %6149 = vmatprep.subr.msk.bf16.mxu0 %vm6926_vm12, %v6593_v62 }
  0x58   : > { %6151 = vmatpush3.bf16.msk.msra.mxu0 %vm6926_vm12, %v6593_v62 }
  0x59   : > { %6153 = vmatprep.subr.bf16.mxu0 %v6975_v4 }
  0xb3   : > { %v403_v8 = vpop.permute.xlu0 %402 }
  0xb4   : > { %v427_v11 = vsel %vm426_vm6, %v403_v8, %v6765_v19  ;;  %v407_v12 = vpop.permute.xlu1 %406 }
  0xb5   : > { %v6888_v16 = vmax.f32 %v6765_v19, %v427_v11  ;;  %v429_v17 = vsel %vm426_vm6, %v407_v12, %v6770_v24  ;;  %v738_v11 = vsub.f32 %v736_v37, %v737_v60 }
  0xb6   : > { %v6901_v22 = vmax.f32 %v6770_v24, %v429_v17  ;;  %v5470_v24 = vsel %vm509_vm8, 1.0, %v6594_v1  ;;  %vm1491_vm8 = vcmp.eq.s32.totalorder %v6817_v58, 15 }
  0xb7   : > { %451 = vrot.lane.b32.xlu0 %v6888_v16, %s6595_s10  ;;  %v405_v19 = vpop.permute.xlu0 %404  ;;  %v743_v38 = vsub.f32 %v5470_v24, %v5470_v24 }
  0xb8   : > { %v428_v26 = vsel %vm426_vm6, %v405_v19, %v6782_v34  ;;  %v409_v27 = vpop.permute.xlu1 %408 }
  0xb9   : > { %v6918_v29 = vmax.f32 %v6782_v34, %v428_v26  ;;  %v430_v30 = vsel %vm426_vm6, %v409_v27, %v6787_v40  ;;  %v723_v34 = vand.u32 4294901760, %v6895_v18  ;;  %v744_v63 = vand.u32 4294901760, %v743_v38 }
  0xba   : > { %v6941_v35 = vmax.f32 %v6787_v40, %v430_v30  ;;  %v5471_v40 = vsel %vm510_vm10, 1.0, %v6594_v1  ;;  %v759_v26 = vsub.f32 %v757_v49, %v758_v15  ;;  %v7006_v33 = vpack.c.bf16 %v743_v38, %v736_v37 }
  0xbb   : > { %455 = vrot.lane.b32.xlu0 %v6901_v22, %s6595_s10  ;;  %453 = vrot.lane.b32.xlu1 %v6918_v29, %s6595_s10  ;;  %v411_v36 = vpop.permute.xlu0 %410  ;;  %v750_v47 = vsub.f32 %v5471_v40, %v5471_v40  ;;  %v724_v52 = vsub.f32 %v6895_v18, %v723_v34  ;;  %v745_v12 = vsub.f32 %v743_v38, %v744_v63  ;;  %vm3115_vm10 = vcmask 72704  }
  0xbc   : > { %v431_v41 = vsel %vm426_vm6, %v411_v36, %v6795_v48  ;;  %v413_v42 = vpop.permute.xlu1 %412  ;;  %v760_v24 = vand.u32 4294901760, %v759_v26  ;;  %v7018_v40 = vpack.c.bf16 %v744_v63, %v737_v60 }
  0xbd   : > { %v6960_v45 = vmax.f32 %v6795_v48, %v431_v41  ;;  %v432_v46 = vsel %vm426_vm6, %v413_v42, %v6799_v50  ;;  %v725_v5 = vand.u32 4294901760, %v724_v52  ;;  %v751_v14 = vand.u32 4294901760, %v750_v47 }
  0xbe   : > { %v6967_v56 = vmax.f32 %v6799_v50, %v432_v46  ;;  %v746_v20 = vand.u32 4294901760, %v745_v12  ;;  %v7008_v36 = vpack.c.bf16 %v757_v49, %v750_v47  ;;  %v7014_v41 = vpack.c.bf16 %v716_v25, %v709_v21 }
  0xbf   : > { %457 = vrot.lane.b32.xlu1 %v6941_v35, %s6595_s10  ;;  %459 = vrot.lane.b32.xlu0 %v6960_v45, %s6595_s10  ;;  %v415_v48 = vpop.permute.xlu0 %414  ;;  %v6983_v13 = vpack.c.bf16 %v732_v6, %v725_v5  ;;  %v752_v19 = vsub.f32 %v750_v47, %v751_v14  ;;  %v7016_v42 = vpack.c.bf16 %v730_v39, %v723_v34 }
  0xc0   : > { %v433_v0 = vsel %vm426_vm6, %v415_v48, %v6805_v54  ;;  %v417_v2 = vpop.permute.xlu1 %416  ;;  %v7020_v43 = vpack.c.bf16 %v758_v15, %v751_v14 }
  0xc1   : > { %v6978_v50 = vmax.f32 %v6805_v54, %v433_v0  ;;  %v434_v8 = vsel %vm426_vm6, %v417_v2, %v6809_v55  ;;  %v739_v54 = vand.u32 4294901760, %v738_v11  ;;  %v753_v28 = vand.u32 4294901760, %v752_v19 }
  0xc2   : > { %v6986_v17 = vmax.f32 %v6809_v55, %v434_v8  ;;  %v7000_v55 = vpack.c.bf16 %v6865_v9, %v6861_v7 }
  0xc3   : > { %461 = vrot.lane.b32.xlu1 %v6967_v56, %s6595_s10  ;;  %463 = vrot.lane.b32.xlu0 %v6978_v50, %s6595_s10  ;;  %v6992_v27 = vpack.c.bf16 %v746_v20, %v739_v54  ;;  %v6996_v30 = vpack.c.bf16 %v760_v24, %v753_v28 }
  0xc7   : > { %465 = vrot.lane.b32.xlu1 %v6986_v17, %s6595_s10 }
 0x129   : > { %v452_v44 = vpop.permute.xlu0 %451 }
 0x12a   : > { %v476_v18 = vsel %vm475_vm13, %v452_v44, %v6888_v16 }
 0x12b   : > { %v484_v23 = vmax.f32 %v6888_v16, %v476_v18 }
 0x12d   : > { %v530_v7 = vsel %vm528_vm14, %v484_v23, 0  ;;  %v454_v37 = vpop.permute.xlu1 %453  ;;  %v456_v9 = vpop.permute.xlu0 %455 }
 0x12e   : > { %v7026_v21 = vand.u32 4294901760, %v530_v7  ;;  %v477_v25 = vsel %vm475_vm13, %v454_v37, %v6918_v29  ;;  %v478_v34 = vsel %vm475_vm13, %v456_v9, %v6901_v22 }
 0x12f   : > { %v485_v38 = vmax.f32 %v6918_v29, %v477_v25  ;;  %v486_v39 = vmax.f32 %v6901_v22, %v478_v34 }
 0x130   : > { %v7035_v46 = vsub.f32 %v530_v7, %v7026_v21 }
 0x131   : > { %v533_v16 = vsel %vm528_vm14, %v485_v38, 0  ;;  %v536_v47 = vsel %vm528_vm14, %v486_v39, 0  ;;  %v458_v49 = vpop.permute.xlu1 %457  ;;  %v460_v51 = vpop.permute.xlu0 %459 }
 0x132   : > { %v7039_v52 = vand.u32 4294901760, %v533_v16  ;;  %v7041_v53 = vand.u32 4294901760, %v536_v47  ;;  %v479_v48 = vsel %vm475_vm13, %v458_v49, %v6941_v35  ;;  %v480_v29 = vsel %vm475_vm13, %v460_v51, %v6960_v45 }
 0x133   : > { %v487_v22 = vmax.f32 %v6941_v35, %v479_v48  ;;  %v488_v60 = vmax.f32 %v6960_v45, %v480_v29  ;;  %v628_v63 = vand.u32 4294901760, %v7035_v46 }
 0x134   : > { %v7051_v0 = vsub.f32 %v533_v16, %v7039_v52  ;;  %v7054_v2 = vsub.f32 %v536_v47, %v7041_v53 }
 0x135   : > { %v539_v5 = vsel %vm528_vm14, %v487_v22, 0  ;;  %v542_v6 = vsel %vm528_vm14, %v488_v60, 0  ;;  %v462_v8 = vpop.permute.xlu1 %461  ;;  %v464_v11 = vpop.permute.xlu0 %463  ;;  %v629_v35 = vsub.f32 %v7035_v46, %v628_v63 }
 0x136   : > { %v7061_v12 = vand.u32 4294901760, %v539_v5  ;;  %v7063_v45 = vand.u32 4294901760, %v542_v6  ;;  %v481_v14 = vsel %vm475_vm13, %v462_v8, %v6967_v56  ;;  %v482_v15 = vsel %vm475_vm13, %v464_v11, %v6978_v50 }
 0x137   : > { %v489_v54 = vmax.f32 %v6967_v56, %v481_v14  ;;  %v490_v20 = vmax.f32 %v6978_v50, %v482_v15  ;;  %v630_v19 = vand.u32 4294901760, %v629_v35  ;;  %v638_v26 = vand.u32 4294901760, %v7051_v0 }
 0x138   : > { %v7073_v28 = vsub.f32 %v539_v5, %v7061_v12  ;;  %v7076_v24 = vsub.f32 %v542_v6, %v7063_v45  ;;  %v648_v44 = vand.u32 4294901760, %v7054_v2 }
 0x139   : > { %v545_v18 = vsel %vm528_vm14, %v489_v54, 0  ;;  %v548_v23 = vsel %vm528_vm14, %v490_v20, 0  ;;  %5768 = vmatprep.mubr.f32.mxu0 %v630_v19  ;;  %v466_v7 = vpop.permute.xlu1 %465  ;;  %v639_v56 = vsub.f32 %v7051_v0, %v638_v26 }
 0x13a   : > { %v7084_v50 = vand.u32 4294901760, %v545_v18  ;;  %v7086_v37 = vand.u32 4294901760, %v548_v23  ;;  %v483_v9 = vsel %vm475_vm13, %v466_v7, %v6986_v17  ;;  %v649_v25 = vsub.f32 %v7054_v2, %v648_v44 }
 0x13b   : > { %v491_v34 = vmax.f32 %v6986_v17, %v483_v9  ;;  %v640_v38 = vand.u32 4294901760, %v639_v56  ;;  %v658_v39 = vand.u32 4294901760, %v7073_v28  ;;  %v668_v16 = vand.u32 4294901760, %v7076_v24 }
 0x13c   : > { %v7097_v47 = vsub.f32 %v545_v18, %v7084_v50  ;;  %v7100_v49 = vsub.f32 %v548_v23, %v7086_v37  ;;  %v650_v51 = vand.u32 4294901760, %v649_v25 }
 0x13d   : > { %v551_v48 = vsel %vm528_vm14, %v491_v34, 0  ;;  %5769 = vmatmul.mubr.f32.vlgmr.msra.gmra.mrb[0].mxu0 %v640_v38  ;;  %v659_v29 = vsub.f32 %v7073_v28, %v658_v39  ;;  %v669_v17 = vsub.f32 %v7076_v24, %v668_v16  ;;  %v7294_v34 = vmul.u32 2, %v6817_v58 }
 0x13e   : > { %v7109_v22 = vand.u32 4294901760, %v551_v48  ;;  %6155 = vmatpush3.bf16.msra.mxu0 %v6975_v4  ;;  %5771 = vmatprep.mubr.f32.mxu0 %v650_v51  ;;  %v678_v60 = vand.u32 4294901760, %v7097_v47  ;;  %v688_v5 = vand.u32 4294901760, %v7100_v49  ;;  %vm3160_vm14 = vcmask 64512  }
 0x13f   : > { %6157 = vmatprep.subr.bf16.mxu0 %v6983_v13  ;;  %v660_v6 = vand.u32 4294901760, %v659_v29  ;;  %v670_v8 = vand.u32 4294901760, %v669_v17  ;;  %vm3169_vm11 = vcmp.eq.s32.totalorder %v6815_v57, %v7294_v34 }
 0x140   : > { %v7116_v11 = vsub.f32 %v551_v48, %v7109_v22  ;;  %v679_v35 = vsub.f32 %v7097_v47, %v678_v60  ;;  %v689_v4 = vsub.f32 %v7100_v49, %v688_v5  ;;  %vm7684_vm13 = vmpackc.low %vm1441_vm1, %vm3169_vm11 }
 0x141   : > { %5772 = vmatmul.mubr.f32.gmra.mrb[2].mxu0 %v660_v6 }
 0x142   : > { %6159 = vmatpush3.bf16.msra.mxu0 %v6983_v13  ;;  %5774 = vmatprep.mubr.f32.mxu0 %v670_v8  ;;  %v680_v14 = vand.u32 4294901760, %v679_v35  ;;  %v690_v15 = vand.u32 4294901760, %v689_v4  ;;  %v698_v54 = vand.u32 4294901760, %v7116_v11  ;;  %v6599_v4 = vmov 1966171168  }
 0x143   : > { %6161 = vmatprep.subr.bf16.mxu0 %v6992_v27 }
 0x144   : > { %v699_v20 = vsub.f32 %v7116_v11, %v698_v54 }
 0x145   : > { %5775 = vmatmul.mubr.f32.gmra.mrb[4].mxu0 %v680_v14  ;;  %v1519_v14 = vunpack.c.l.s4 %v6599_v4 }
 0x146   : > { %6163 = vmatpush3.bf16.msra.mxu0 %v6992_v27  ;;  %5777 = vmatprep.mubr.f32.mxu0 %v690_v15  ;;  %v700_v19 = vand.u32 4294901760, %v699_v20 }
 0x147   : > { %6165 = vmatprep.subr.bf16.mxu0 %v6996_v30  ;;  %v1520_v15 = vunpack.c.0.s8 %v1519_v14 }
 0x149   : > { %5778 = vmatmul.mubr.f32.gmra.mrb[6].mxu0 %v700_v19  ;;  %v7328_v20 = vsub.s32 %v1520_v15, %v6815_v57 }
 0x14a   : > { %6167 = vmatpush3.bf16.msra.mxu0 %v6996_v30  ;;  %5796 = vmatprep.mubr.f32.mxu0 %v7026_v21 }
 0x14b   : > { %6169 = vmatprep.subr.bf16.mxu0 %v7000_v55 }
 0x14d   : > { %5797 = vmatmul.mubr.f32.vlgmr.msra.gmra.mrb[0].mxu0 %v7039_v52 }
 0x14e   : > { %6171 = vmatpush3.bf16.msra.mxu0 %v7000_v55  ;;  %5799 = vmatprep.mubr.f32.mxu0 %v7041_v53 }
 0x14f   : > { %6173 = vmatprep.subr.bf16.mxu0 %v7004_v32 }
 0x151   : > { %5800 = vmatmul.mubr.f32.gmra.mrb[2].mxu0 %v7061_v12 }
 0x152   : > { %6175 = vmatpush3.bf16.msra.mxu0 %v7004_v32  ;;  %5802 = vmatprep.mubr.f32.mxu0 %v7063_v45 }
 0x153   : > { %6177 = vmatprep.subr.bf16.mxu0 %v7006_v33 }
 0x155   : > { %5803 = vmatmul.mubr.f32.gmra.mrb[4].mxu0 %v7084_v50 }
 0x156   : > { %6179 = vmatpush3.bf16.msra.mxu0 %v7006_v33  ;;  %5805 = vmatprep.mubr.f32.mxu0 %v7086_v37 }
 0x157   : > { %6181 = vmatprep.subr.bf16.mxu0 %v7008_v36 }
 0x159   : > { %5806 = vmatmul.mubr.f32.gmra.mrb[6].mxu0 %v7109_v22 }
 0x15a   : > { %6183 = vmatpush3.bf16.msra.mxu0 %v7008_v36  ;;  %5824 = vmatprep.mubr.f32.mxu0 %v7035_v46 }
 0x15b   : > { %6185 = vmatprep.subr.msk.bf16.mxu0 %vm6829_vm2, %v6593_v62 }
 0x15d   : > { %5825 = vmatmul.mubr.f32.vlgmr.msra.gmra.mrb[0].mxu0 %v7051_v0 }
 0x15e   : > { %6187 = vmatpush3.bf16.msk.msra.mxu0 %vm6829_vm2, %v6593_v62  ;;  %5827 = vmatprep.mubr.f32.mxu0 %v7054_v2 }
 0x15f   : > { %6189 = vmatprep.subr.msk.bf16.mxu0 %vm6848_vm5, %v6593_v62 }
 0x161   : > { %5828 = vmatmul.mubr.f32.gmra.mrb[2].mxu0 %v7073_v28 }
 0x162   : > { %6191 = vmatpush3.bf16.msk.msra.mxu0 %vm6848_vm5, %v6593_v62  ;;  %5830 = vmatprep.mubr.f32.mxu0 %v7076_v24 }
 0x163   : > { %6193 = vmatprep.subr.msk.bf16.mxu0 %vm6871_vm9, %v6593_v62 }
 0x165   : > { %5831 = vmatmul.mubr.f32.gmra.mrb[4].mxu0 %v7097_v47 }
 0x166   : > { %6195 = vmatpush3.bf16.msk.msra.mxu0 %vm6871_vm9, %v6593_v62  ;;  %5833 = vmatprep.mubr.f32.mxu0 %v7100_v49 }
 0x167   : > { %6197 = vmatprep.subr.msk.bf16.mxu0 %vm6926_vm12, %v6593_v62 }
 0x169   : > { %5834 = vmatmul.mubr.f32.gmra.mrb[6].mxu0 %v7116_v11 }
 0x16a   : > { %6199 = vmatpush3.bf16.msk.msra.mxu0 %vm6926_vm12, %v6593_v62  ;;  %5852 = vmatprep.mubr.f32.mxu0 %v628_v63 }
 0x16b   : > { %6201 = vmatprep.subr.bf16.mxu0 %v7014_v41 }
 0x16d   : > { %5853 = vmatmul.mubr.f32.vlgmr.msra.gmra.mrb[0].mxu0 %v638_v26 }
 0x16e   : > { %6203 = vmatpush3.bf16.msra.mxu0 %v7014_v41  ;;  %5855 = vmatprep.mubr.f32.mxu0 %v648_v44 }
 0x16f   : > { %6205 = vmatprep.subr.bf16.mxu0 %v7016_v42 }
 0x171   : > { %5856 = vmatmul.mubr.f32.gmra.mrb[2].mxu0 %v658_v39  ;;  %v6597_v39 = vmov 0.0|0.0  }
 0x172   : > { %6207 = vmatpush3.bf16.msra.mxu0 %v7016_v42  ;;  %5858 = vmatprep.mubr.f32.mxu0 %v668_v16 }
 0x173   : > { %6209 = vmatprep.subr.bf16.mxu0 %v7018_v40  ;;  %6232 = vmatprep.subr.bf16.mxu1 %v6597_v39 }
 0x175   : > { %5859 = vmatmul.mubr.f32.gmra.mrb[4].mxu0 %v678_v60 }
 0x176   : > { %6211 = vmatpush3.bf16.msra.mxu0 %v7018_v40  ;;  %5861 = vmatprep.mubr.f32.mxu0 %v688_v5 }
 0x177   : > { %6213 = vmatprep.subr.bf16.mxu0 %v7020_v43 }
 0x179   : > { %5862 = vmatmul.mubr.f32.gmra.mrb[6].mxu0 %v698_v54 }
 0x17a   : > { %6215 = vmatpush3.bf16.msra.mxu0 %v7020_v43  ;;  %5880 = vmatprep.mubr.f32.mxu0 %v7026_v21 }
 0x17b   : > { %6217 = vmatprep.subr.msk.bf16.mxu0 %vm6829_vm2, %v6593_v62 }
 0x17d   : > { %5881 = vmatmul.mubr.f32.vlgmr.msra.gmra.mrb[0].mxu0 %v7039_v52 }
 0x17e   : > { %6219 = vmatpush3.bf16.msk.msra.mxu0 %vm6829_vm2, %v6593_v62  ;;  %5883 = vmatprep.mubr.f32.mxu0 %v7041_v53  ;;  %vm1501_vm2 = vcmp.lt.s32.totalorder %v7294_v34, 15 }
 0x17f   : > { %6221 = vmatprep.subr.msk.bf16.mxu0 %vm6848_vm5, %v6593_v62  ;;  %v1502_v38 = vsel %vm1501_vm2, %v7294_v34, 15  ;;  %vm3953_vm2 = vcmask 1043456  }
 0x180   : > { %vm1503_vm3 = vcmp.eq.s32.totalorder %v6815_v57, %v1502_v38  ;;  %vm1504_vm4 = vcmp.eq.s32.totalorder %v6820_v59, %v1502_v38 }
 0x181   : > { %5884 = vmatmul.mubr.f32.gmra.mrb[2].mxu0 %v7061_v12  ;;  %v5497_v16 = vsel %vm1503_vm3, 1.0, %v6594_v1  ;;  %v5498_v47 = vsel %vm1504_vm4, 1.0, %v6594_v1  ;;  %vm7305_vm6 = vmpackc.low %vm1504_vm4, %vm1503_vm3  ;;  %vm3948_vm4 = vcmask 31744  }
 0x182   : > { %6223 = vmatpush3.bf16.msk.msra.mxu0 %vm6848_vm5, %v6593_v62  ;;  %5886 = vmatprep.mubr.f32.mxu0 %v7063_v45  ;;  %vm6598_vm5 = vmmov 0   ;;  %v7312_v51 = vsub.f32 %v5497_v16, %v5497_v16  ;;  %v7314_v48 = vsub.f32 %v5498_v47, %v5498_v47 }
 0x183   : > { %6225 = vmatprep.subr.msk.bf16.mxu0 %vm6871_vm9, %v6593_v62  ;;  %5924 = vmatprep.mubr.msk.f32.mxu1 %vm6598_vm5, %v6594_v1 }
 0x184   : > { %6234 = vmatpush3.bf16.msk.msra.mxu1 %vm7305_vm6, %v6593_v62  ;;  %v2119_v29 = vand.u32 4294901760, %v7312_v51  ;;  %v2126_v17 = vand.u32 4294901760, %v7314_v48  ;;  %v6239_v11 = vpack.c.bf16 %v7314_v48, %v7312_v51 }
 0x185   : > { %5887 = vmatmul.mubr.f32.gmra.mrb[4].mxu0 %v7084_v50  ;;  %6235 = vmatprep.subr.bf16.mxu1 %v6597_v39 }
 0x186   : > { %6227 = vmatpush3.bf16.msk.msra.mxu0 %vm6871_vm9, %v6593_v62  ;;  %5889 = vmatprep.mubr.f32.mxu0 %v7086_v37  ;;  %v2127_v60 = vsub.f32 %v7314_v48, %v2126_v17  ;;  %v7325_v35 = vpack.c.bf16 %v2126_v17, %v2119_v29  ;;  %vm3117_vm9 = vcmask 65536  }
 0x187   : > { %6229 = vmatprep.subr.msk.bf16.mxu0 %vm6926_vm12, %v6593_v62 }
 0x188   : > { %v2128_v6 = vand.u32 4294901760, %v2127_v60 }
 0x189   : > { %5890 = vmatmul.mubr.f32.gmra.mrb[6].mxu0 %v7109_v22 }
 0x18a   : > { %6231 = vmatpush3.bf16.msk.msra.mxu0 %vm6926_vm12, %v6593_v62  ;;  %5908 = vmatprep.mubr.f32.mxu0 %v7026_v21  ;;  %vm3170_vm12 = vcmp.eq.s32.totalorder %v6820_v59, %v7294_v34 }
 0x18d   : > { %5909 = vmatmul.mubr.f32.vlgmr.msra.gmra.mrb[0].mxu0 %v7039_v52 }
 0x18e   : > { %5911 = vmatprep.mubr.f32.mxu0 %v7041_v53 }
 0x191   : > { %5912 = vmatmul.mubr.f32.gmra.mrb[2].mxu0 %v7061_v12 }
 0x192   : > { %5914 = vmatprep.mubr.f32.mxu0 %v7063_v45 }
 0x195   : > { %5915 = vmatmul.mubr.f32.gmra.mrb[4].mxu0 %v7084_v50 }
 0x196   : > { %5917 = vmatprep.mubr.f32.mxu0 %v7086_v37 }
 0x199   : > { %5918 = vmatmul.mubr.f32.gmra.mrb[6].mxu0 %v7109_v22  ;;  %v2120_v22 = vsub.f32 %v7312_v51, %v2119_v29 }
 0x19b   : > { %v2121_v5 = vand.u32 4294901760, %v2120_v22 }
 0x19d   : > { %v7321_v8 = vpack.c.bf16 %v2128_v6, %v2121_v5 }
 0x260   : > { %v5910_v61 = vpop.f32.mrb[0].mxu0 }
 0x261   : > { %1393 = vst.msk [vmem:[#allocation2 + $0x8] sm:$0xff] %vm1391_vm15, %v5910_v61  ;;  %v1345_v3 = vpop.f32.mrb[1].mxu0 }
 0x262   : > { %1392 = vst.msk [vmem:[#allocation2] sm:$0xff] %vm1391_vm15, %v1345_v3 }
 0x264   : > { %v5913_v10 = vpop.f32.mrb[2].mxu0 }
 0x265   : > { %1395 = vst.msk [vmem:[#allocation2 + $0x18] sm:$0xff] %vm1391_vm15, %v5913_v10  ;;  %v1357_v31 = vpop.f32.mrb[3].mxu0 }
 0x266   : > { %1394 = vst.msk [vmem:[#allocation2 + $0x10] sm:$0xff] %vm1391_vm15, %v1357_v31 }
 0x268   : > { %v5916_v13 = vpop.f32.mrb[4].mxu0 }
 0x269   : > { %1397 = vst.msk [vmem:[#allocation2 + $0x28] sm:$0xff] %vm1391_vm15, %v5916_v13  ;;  %v1369_v27 = vpop.f32.mrb[5].mxu0  ;;  %v1405_v30 = vld [vmem:[#allocation2 + $0x1] ss:$2 sm:$0xff]  ;;  %v1400_v21 = vld [vmem:[#allocation2] sm:$0x1] }
 0x26a   : > { %1396 = vst.msk [vmem:[#allocation2 + $0x20] sm:$0xff] %vm1391_vm15, %v1369_v27  ;;  %v1413_v55 = vld [vmem:[#allocation2 + $0x2] ss:$2 sm:$0x7f] }
 0x26b   : > { %v1420_v32 = vmax.f32 %v1405_v30, %v1413_v55 }
 0x26c   : > { %v5919_v33 = vpop.f32.mrb[6].mxu0 }
 0x26d   : > { %1399 = vst.msk [vmem:[#allocation2 + $0x38] sm:$0xff] %vm1391_vm15, %v5919_v33  ;;  %v1381_v36 = vpop.f32.mrb[7].mxu0  ;;  %v1425_v41 = vsel %vm1424_vm0, %v1420_v32, %v1405_v30  ;;  %v1407_v42 = vld [vmem:[#allocation2 + $0x11] ss:$2 sm:$0xff]  ;;  %v1401_v12 = vld [vmem:[#allocation2 + $0x10] sm:$0x1] }
 0x26e   : > { %1398 = vst.msk [vmem:[#allocation2 + $0x30] sm:$0xff] %vm1391_vm15, %v1381_v36  ;;  %v7250_v40 = vrot.slane %v1425_v41, 7  ;;  %v1415_v43 = vld [vmem:[#allocation2 + $0x12] ss:$2 sm:$0x7f] }
 0x26f   : > { %v1421_v46 = vmax.f32 %v1407_v42, %v1415_v43 }
 0x270   : > { %v7254_v52 = vsel %vm1441_vm1, %v1400_v21, %v7250_v40 }
 0x271   : > { %1450 = vrot.lane.b32.xlu0 %v7254_v52, %s6596_s12  ;;  %v1426_v53 = vsel %vm1424_vm0, %v1421_v46, %v1407_v42  ;;  %v1409_v63 = vld [vmem:[#allocation2 + $0x21] ss:$2 sm:$0xff]  ;;  %v1417_v2 = vld [vmem:[#allocation2 + $0x22] ss:$2 sm:$0x7f] }
 0x272   : > { %v7259_v0 = vrot.slane %v1426_v53, 7  ;;  %v1422_v45 = vmax.f32 %v1409_v63, %v1417_v2  ;;  %v1402_v23 = vld [vmem:[#allocation2 + $0x20] sm:$0x1] }
 0x274   : > { %v7263_v26 = vsel %vm1441_vm1, %v1401_v12, %v7259_v0  ;;  %v1427_v28 = vsel %vm1424_vm0, %v1422_v45, %v1409_v63 }
 0x275   : > { %1452 = vrot.lane.b32.xlu0 %v7250_v40, %s6596_s12  ;;  %1454 = vrot.lane.b32.xlu1 %v7263_v26, %s6596_s12  ;;  %v1411_v24 = vld [vmem:[#allocation2 + $0x31] ss:$2 sm:$0xff]  ;;  %v7270_v44 = vrot.slane %v1427_v28, 7  ;;  %v1419_v18 = vld [vmem:[#allocation2 + $0x32] ss:$2 sm:$0x7f] }
 0x276   : > { %v1423_v7 = vmax.f32 %v1411_v24, %v1419_v18  ;;  %v1403_v9 = vld [vmem:[#allocation2 + $0x30] sm:$0x1] }
 0x277   : > { %v7274_v56 = vsel %vm1441_vm1, %v1402_v23, %v7270_v44 }
 0x278   : > { %v1428_v50 = vsel %vm1424_vm0, %v1423_v7, %v1411_v24  ;;  %vm3774_vm0 = vcmp.lt.s32.totalorder %v7294_v34, 3 }
 0x279   : > { %1456 = vrot.lane.b32.xlu0 %v7259_v0, %s6596_s12  ;;  %1458 = vrot.lane.b32.xlu1 %v7274_v56, %s6596_s12  ;;  %v7281_v37 = vrot.slane %v1428_v50, 7 }
 0x27b   : > { %v7285_v25 = vsel %vm1441_vm1, %v1403_v9, %v7281_v37 }
 0x27d   : > { %1460 = vrot.lane.b32.xlu0 %v7270_v44, %s6596_s12  ;;  %1462 = vrot.lane.b32.xlu1 %v7285_v25, %s6596_s12 }
 0x281   : > { %1464 = vrot.lane.b32.xlu1 %v7281_v37, %s6596_s12 }
 0x2e3   : > { %v1451_v54 = vpop.permute.xlu0 %1450 }
 0x2e4   : > { %v1475_v19 = vsel %vm1474_vm7, %v7254_v52, %v1451_v54 }
 0x2e5   : > { %v1483_v61 = vmax.f32 %v7254_v52, %v1475_v19 }
 0x2e7   : > { %v1492_v3 = vsel %vm1491_vm8, %v7254_v52, %v1483_v61  ;;  %v1453_v10 = vpop.permute.xlu0 %1452  ;;  %v1455_v31 = vpop.permute.xlu1 %1454 }
 0x2e8   : > { %v1517_v13 = vcombine.high %v1492_v3, %v1492_v3  ;;  %v1524_v27 = vrot.slane %v1492_v3, %v7328_v20  ;;  %v1476_v30 = vsel %vm1474_vm7, %v7250_v40, %v1453_v10  ;;  %v1477_v55 = vsel %vm1474_vm7, %v7263_v26, %v1455_v31 }
 0x2e9   : > { %v1484_v32 = vmax.f32 %v7250_v40, %v1476_v30  ;;  %v1485_v33 = vmax.f32 %v7263_v26, %v1477_v55 }
 0x2ea   : > { %v1531_v36 = vrot.slane %v1517_v13, %v7328_v20  ;;  %v1532_v41 = vcombine.high %v1524_v27, %v1524_v27  ;;  %v1540_v42 = vrot.slane %v1524_v27, %v7328_v20 }
 0x2eb   : > { %v1493_v43 = vsel %vm1491_vm8, %v7250_v40, %v1484_v32  ;;  %v1494_v21 = vsel %vm1491_vm8, %v7263_v26, %v1485_v33  ;;  %v1457_v46 = vpop.permute.xlu0 %1456  ;;  %v1459_v52 = vpop.permute.xlu1 %1458 }
 0x2ec   : > { %v1533_v53 = vcombine.high %v1531_v36, %v1531_v36  ;;  %v1547_v63 = vrot.slane %v1531_v36, %v7328_v20  ;;  %v1554_v2 = vrot.slane %v1532_v41, %v7328_v20  ;;  %v1572_v12 = vrot.slane %v1493_v43, %v7328_v20 }
 0x2ed   : > { %v1580_v45 = vcombine.high %v1494_v21, %v1494_v21  ;;  %v1587_v28 = vrot.slane %v1494_v21, %v7328_v20  ;;  %v1478_v24 = vsel %vm1474_vm7, %v7259_v0, %v1457_v46  ;;  %v1479_v40 = vsel %vm1474_vm7, %v7274_v56, %v1459_v52 }
 0x2ee   : > { %v1561_v26 = vrot.slane %v1533_v53, %v7328_v20  ;;  %v1769_v18 = vcombine.low %v1540_v42, %v1554_v2  ;;  %v5499_v23 = vcombine.high %v1540_v42, %v1554_v2  ;;  %v1579_v7 = vrot.slane %v1572_v12, %v7328_v20 }
 0x2ef   : > { %v1594_v50 = vrot.slane %v1580_v45, %v7328_v20  ;;  %v1595_v9 = vcombine.high %v1587_v28, %v1587_v28  ;;  %v1603_v38 = vrot.slane %v1587_v28, %v7328_v20  ;;  %v1486_v16 = vmax.f32 %v7259_v0, %v1478_v24  ;;  %v1463_v47 = vpop.permute.xlu1 %1462  ;;  %v1461_v15 = vpop.permute.xlu0 %1460 }
 0x2f0   : > { %v1771_v29 = vcombine.low %v1547_v63, %v1561_v26  ;;  %v5500_v17 = vcombine.high %v1547_v63, %v1561_v26  ;;  %v1779_v22 = vrot.slane %v1769_v18, %v7328_v20  ;;  %v1786_v60 = vrot.slane %v5499_v23, %v7328_v20 }
 0x2f1   : > { %v1596_v5 = vcombine.high %v1594_v50, %v1594_v50  ;;  %v1610_v6 = vrot.slane %v1594_v50, %v7328_v20  ;;  %v1617_v4 = vrot.slane %v1595_v9, %v7328_v20  ;;  %v1625_v14 = vcombine.high %v1603_v38, %v1603_v38 }
 0x2f2   : > { %v1793_v54 = vrot.slane %v1771_v29, %v7328_v20  ;;  %v1800_v19 = vrot.slane %v5500_v17, %v7328_v20  ;;  %v1818_v61 = vcombine.low %v1579_v7, %v1603_v38  ;;  %v1495_v3 = vsel %vm1491_vm8, %v7259_v0, %v1486_v16 }
 0x2f3   : > { %v1624_v10 = vrot.slane %v1596_v5, %v7328_v20  ;;  %v1626_v31 = vcombine.high %v1610_v6, %v1610_v6  ;;  %v1627_v13 = vcombine.high %v1617_v4, %v1617_v4  ;;  %v7375_v27 = vcombine.low %v1617_v4, %v1625_v14  ;;  %v1465_v43 = vpop.permute.xlu1 %1464 }
 0x2f4   : > { %v7378_v30 = vrot.slane %v1818_v61, %v7328_v20  ;;  %v1635_v55 = vrot.slane %v1495_v3, %v7328_v20  ;;  %v1487_v32 = vmax.f32 %v7274_v56, %v1479_v40  ;;  %v1480_v33 = vsel %vm1474_vm7, %v7270_v44, %v1461_v15 }
 0x2f5   : > { %v7384_v36 = vcombine.low %v1627_v13, %v1610_v6  ;;  %v7386_v41 = vcombine.low %v1624_v10, %v1626_v31  ;;  %v1835_v0 = vrot.slane %v7375_v27, %v7328_v20  ;;  %v1628_v42 = vcombine.high %v1624_v10, %v1624_v10 }
 0x2f6   : > { %v1642_v21 = vrot.slane %v1635_v55, %v7328_v20  ;;  %v1496_v46 = vsel %vm1491_vm8, %v7274_v56, %v1487_v32  ;;  %v1488_v52 = vmax.f32 %v7270_v44, %v1480_v33  ;;  %v1481_v53 = vsel %vm1474_vm7, %v7285_v25, %v1463_v47 }
 0x2f7   : > { %v1842_v63 = vrot.slane %v7384_v36, %v7328_v20  ;;  %v1643_v2 = vcombine.high %v1496_v46, %v1496_v46  ;;  %v1650_v12 = vrot.slane %v1496_v46, %v7328_v20  ;;  %v1489_v45 = vmax.f32 %v7285_v25, %v1481_v53 }
 0x2f8   : > { %v1867_v28 = vcombine.low %v1628_v42, %v1642_v21  ;;  %v1497_v24 = vsel %vm1491_vm8, %v7270_v44, %v1488_v52  ;;  %v1482_v56 = vsel %vm1474_vm7, %v7281_v37, %v1465_v43  ;;  %v1801_v40 = vcombine.low %v1779_v22, %v1786_v60 }
 0x2f9   : > { %v1657_v26 = vrot.slane %v1643_v2, %v7328_v20  ;;  %v1658_v18 = vcombine.high %v1650_v12, %v1650_v12  ;;  %v1666_v23 = vrot.slane %v1650_v12, %v7328_v20  ;;  %v1698_v7 = vrot.slane %v1497_v24, %v7328_v20 }
 0x2fa   : > { %v1877_v50 = vrot.slane %v1867_v28, %v7328_v20  ;;  %v1498_v9 = vsel %vm1491_vm8, %v7285_v25, %v1489_v45  ;;  %v1490_v38 = vmax.f32 %v7281_v37, %v1482_v56  ;;  %v1802_v44 = vcombine.low %v1793_v54, %v1800_v19 }
 0x2fb   : > { %v1659_v16 = vcombine.high %v1657_v26, %v1657_v26  ;;  %v1673_v47 = vrot.slane %v1657_v26, %v7328_v20  ;;  %v1680_v29 = vrot.slane %v1658_v18, %v7328_v20  ;;  %v1705_v17 = vrot.slane %v1698_v7, %v7328_v20 }
 0x2fc   : > { %v1706_v22 = vcombine.high %v1498_v9, %v1498_v9  ;;  %v1713_v60 = vrot.slane %v1498_v9, %v7328_v20  ;;  %v1499_v5 = vsel %vm1491_vm8, %v7281_v37, %v1490_v38  ;;  %v1809_v6 = vrot.slane %v1801_v40, %v7328_v20 }
 0x2fd   : > { %v1687_v25 = vrot.slane %v1659_v16, %v7328_v20  ;;  %v1868_v4 = vcombine.low %v1666_v23, %v1680_v29  ;;  %v5501_v14 = vcombine.high %v1666_v23, %v1680_v29  ;;  %v1761_v15 = vrot.slane %v1499_v5, %v7328_v20 }
 0x2fe   : > { %v1720_v54 = vrot.slane %v1706_v22, %v7328_v20  ;;  %v1721_v19 = vcombine.high %v1713_v60, %v1713_v60  ;;  %v1729_v61 = vrot.slane %v1713_v60, %v7328_v20  ;;  %v1816_v3 = vrot.slane %v1802_v44, %v7328_v20 }
 0x2ff   : > { %v1870_v10 = vcombine.low %v1673_v47, %v1687_v25  ;;  %v1884_v31 = vrot.slane %v1868_v4, %v7328_v20  ;;  %v1891_v37 = vrot.slane %v5501_v14, %v7328_v20  ;;  %v5502_v13 = vcombine.high %v1673_v47, %v1687_v25 }
 0x300   : > { %v1722_v27 = vcombine.high %v1720_v54, %v1720_v54  ;;  %v1736_v55 = vrot.slane %v1720_v54, %v7328_v20  ;;  %v1743_v32 = vrot.slane %v1721_v19, %v7328_v20  ;;  %v1751_v33 = vcombine.high %v1729_v61, %v1729_v61 }
 0x301   : > { %v1898_v36 = vrot.slane %v1870_v10, %v7328_v20  ;;  %v1926_v42 = vrot.slane %v5502_v13, %v7328_v20  ;;  %v1917_v43 = vcombine.low %v1705_v17, %v1729_v61  ;;  %v1768_v21 = vrot.slane %v1761_v15, %v7328_v20 }
 0x302   : > { %v1750_v46 = vrot.slane %v1722_v27, %v7328_v20  ;;  %v1752_v52 = vcombine.high %v1736_v55, %v1736_v55  ;;  %v1753_v53 = vcombine.high %v1743_v32, %v1743_v32  ;;  %v1918_v2 = vcombine.low %v1743_v32, %v1751_v33 }
 0x303   : > { %v1933_v12 = vrot.slane %v1917_v43, %v7328_v20  ;;  %v1817_v45 = vcombine.low %v1809_v6, %v1816_v3  ;;  %v1849_v28 = vrot.slane %v7386_v41, %v7328_v20  ;;  %v1850_v24 = vcombine.low %v7378_v30, %v1835_v0 }
 0x304   : > { %v1919_v56 = vcombine.low %v1753_v53, %v1736_v55  ;;  %v1940_v40 = vrot.slane %v1918_v2, %v7328_v20  ;;  %v1965_v26 = vcombine.low %v1750_v46, %v1752_v52  ;;  %v1754_v18 = vcombine.high %v1750_v46, %v1750_v46 }
 0x305   : > { %v1989_v23 = vsel %vm1391_vm15, %v1817_v45, 0  ;;  %v1851_v7 = vcombine.low %v1842_v63, %v1849_v28  ;;  %v1858_v9 = vrot.slane %v1850_v24, %v7328_v20  ;;  %v1899_v38 = vcombine.low %v1877_v50, %v1884_v31 }
 0x306   : > { %v1947_v44 = vrot.slane %v1919_v56, %v7328_v20  ;;  %v1966_v16 = vcombine.low %v1754_v18, %v1768_v21  ;;  %v7443_v47 = vand.u32 4294901760, %v1989_v23  ;;  %v1900_v29 = vcombine.low %v1891_v37, %v1898_v36 }
 0x307   : > { %v1865_v41 = vrot.slane %v1851_v7, %v7328_v20  ;;  %v1907_v30 = vrot.slane %v1899_v38, %v7328_v20  ;;  %v1948_v0 = vcombine.low %v1926_v42, %v1933_v12  ;;  %v1973_v17 = vrot.slane %v1965_v26, %v7328_v20 }
 0x308   : > { %v1980_v22 = vrot.slane %v1966_v16, %v7328_v20  ;;  %v7450_v63 = vsub.f32 %v1989_v23, %v7443_v47  ;;  %v1914_v50 = vrot.slane %v1900_v29, %v7328_v20  ;;  %v1949_v60 = vcombine.low %v1940_v40, %v1947_v44 }
 0x309   : > { %v1866_v5 = vcombine.low %v1858_v9, %v1865_v41  ;;  %v1956_v6 = vrot.slane %v1948_v0, %v7328_v20  ;;  %vm4657_vm8 = vcmask 15360  }
 0x30a   : > { %v2068_v25 = vand.u32 4294901760, %v7450_v63  ;;  %v1915_v4 = vcombine.low %v1907_v30, %v1914_v50  ;;  %v1963_v14 = vrot.slane %v1949_v60, %v7328_v20  ;;  %v1981_v15 = vcombine.low %v1973_v17, %v1980_v22 }
 0x30b   : > { %v1991_v54 = vsel %vm1391_vm15, %v1866_v5, 0 }
 0x30c   : > { %v2069_v19 = vsub.f32 %v7450_v63, %v2068_v25  ;;  %v7460_v61 = vand.u32 4294901760, %v1991_v54  ;;  %v1993_v3 = vsel %vm1391_vm15, %v1915_v4, 0  ;;  %v1964_v10 = vcombine.low %v1956_v6, %v1963_v14 }
 0x30d   : > { %v7463_v31 = vand.u32 4294901760, %v1993_v3  ;;  %v1988_v37 = vrot.slane %v1981_v15, %v7328_v20 }
 0x30e   : > { %v2070_v13 = vand.u32 4294901760, %v2069_v19  ;;  %v2077_v27 = vsub.f32 %v1991_v54, %v7460_v61  ;;  %v1995_v55 = vsel %vm1391_vm15, %v1964_v10, 0 }
 0x30f   : > { %v2087_v32 = vsub.f32 %v1993_v3, %v7463_v31  ;;  %v7469_v33 = vand.u32 4294901760, %v1995_v55  ;;  %v1997_v36 = vsel %vm1391_vm15, %v1988_v37, 0  ;;  %vm3696_vm15 = vcmask 27648  }
 0x310   : > { %5925 = vmatmul.mubr.f32.vlgmr.msra.gmra.mrb[0].mxu1 %v2070_v13  ;;  %v2078_v42 = vand.u32 4294901760, %v2077_v27  ;;  %v7472_v43 = vand.u32 4294901760, %v1997_v36 }
 0x311   : > { %6237 = vmatpush3.bf16.msra.mxu1 %v7321_v8  ;;  %5927 = vmatprep.mubr.msk.f32.mxu1 %vm6598_vm5, %v6594_v1  ;;  %v2088_v21 = vand.u32 4294901760, %v2087_v32  ;;  %v2097_v46 = vsub.f32 %v1995_v55, %v7469_v33 }
 0x312   : > { %v2079_v52 = vsub.f32 %v2077_v27, %v2078_v42  ;;  %6238 = vmatprep.subr.bf16.mxu1 %v6597_v39  ;;  %v2107_v45 = vsub.f32 %v1997_v36, %v7472_v43 }
 0x313   : > { %v2089_v53 = vsub.f32 %v2087_v32, %v2088_v21  ;;  %v2098_v2 = vand.u32 4294901760, %v2097_v46 }
 0x314   : > { %v2080_v12 = vand.u32 4294901760, %v2079_v52  ;;  %v2108_v8 = vand.u32 4294901760, %v2107_v45 }
 0x315   : > { %v2090_v28 = vand.u32 4294901760, %v2089_v53  ;;  %v2099_v24 = vsub.f32 %v2097_v46, %v2098_v2 }
 0x316   : > { %5928 = vmatmul.mubr.f32.gmra.mrb[2].mxu1 %v2080_v12  ;;  %v2109_v40 = vsub.f32 %v2107_v45, %v2108_v8 }
 0x317   : > { %5930 = vmatprep.mubr.msk.f32.mxu1 %vm6598_vm5, %v6594_v1  ;;  %v2100_v56 = vand.u32 4294901760, %v2099_v24 }
 0x318   : > { %v2110_v26 = vand.u32 4294901760, %v2109_v40 }
 0x31a   : > { %5931 = vmatmul.mubr.f32.gmra.mrb[4].mxu1 %v2090_v28 }
 0x31b   : > { %5933 = vmatprep.mubr.msk.f32.mxu1 %vm6598_vm5, %v6594_v1 }
 0x31e   : > { %5934 = vmatmul.mubr.f32.gmra.mrb[6].mxu1 %v2100_v56 }
 0x31f   : > { %5936 = vmatprep.mubr.msk.f32.mxu1 %vm6598_vm5, %v6594_v1 }
 0x322   : > { %5937 = vmatmul.mubr.f32.gmra.mrb[8].mxu1 %v2110_v26 }
 0x323   : > { %5943 = vmatprep.mubr.msk.f32.mxu1 %vm6598_vm5, %v6594_v1 }
 0x326   : > { %5944 = vmatmul.mubr.f32.vlgmr.msra.gmra.mrb[0].mxu1 %v7443_v47 }
 0x327   : > { %6240 = vmatpush3.bf16.msra.mxu1 %v6239_v11  ;;  %5946 = vmatprep.mubr.msk.f32.mxu1 %vm6598_vm5, %v6594_v1 }
 0x328   : > { %6241 = vmatprep.subr.bf16.mxu1 %v6597_v39 }
 0x32a   : > { %5947 = vmatmul.mubr.f32.gmra.mrb[2].mxu1 %v7460_v61 }
 0x32b   : > { %5949 = vmatprep.mubr.msk.f32.mxu1 %vm6598_vm5, %v6594_v1 }
 0x32e   : > { %5950 = vmatmul.mubr.f32.gmra.mrb[4].mxu1 %v7463_v31 }
 0x32f   : > { %5952 = vmatprep.mubr.msk.f32.mxu1 %vm6598_vm5, %v6594_v1 }
 0x332   : > { %5953 = vmatmul.mubr.f32.gmra.mrb[6].mxu1 %v7469_v33 }
 0x333   : > { %5955 = vmatprep.mubr.msk.f32.mxu1 %vm6598_vm5, %v6594_v1 }
 0x336   : > { %5956 = vmatmul.mubr.f32.gmra.mrb[8].mxu1 %v7472_v43 }
 0x337   : > { %5962 = vmatprep.mubr.msk.f32.mxu1 %vm6598_vm5, %v6594_v1 }
 0x33a   : > { %5963 = vmatmul.mubr.f32.vlgmr.msra.gmra.mrb[0].mxu1 %v7450_v63 }
 0x33b   : > { %6243 = vmatpush3.bf16.msk.msra.mxu1 %vm7305_vm6, %v6593_v62  ;;  %5965 = vmatprep.mubr.msk.f32.mxu1 %vm6598_vm5, %v6594_v1 }
 0x33c   : > { %6244 = vmatprep.subr.bf16.mxu1 %v6597_v39 }
 0x33e   : > { %5966 = vmatmul.mubr.f32.gmra.mrb[2].mxu1 %v2077_v27 }
 0x33f   : > { %5968 = vmatprep.mubr.msk.f32.mxu1 %vm6598_vm5, %v6594_v1 }
 0x342   : > { %5969 = vmatmul.mubr.f32.gmra.mrb[4].mxu1 %v2087_v32 }
 0x343   : > { %5971 = vmatprep.mubr.msk.f32.mxu1 %vm6598_vm5, %v6594_v1 }
 0x346   : > { %5972 = vmatmul.mubr.f32.gmra.mrb[6].mxu1 %v2097_v46 }
 0x347   : > { %5974 = vmatprep.mubr.msk.f32.mxu1 %vm6598_vm5, %v6594_v1 }
 0x34a   : > { %5975 = vmatmul.mubr.f32.gmra.mrb[8].mxu1 %v2107_v45 }
 0x34b   : > { %5981 = vmatprep.mubr.msk.f32.mxu1 %vm6598_vm5, %v6594_v1 }
 0x34e   : > { %5982 = vmatmul.mubr.f32.vlgmr.msra.gmra.mrb[0].mxu1 %v2068_v25 }
 0x34f   : > { %6246 = vmatpush3.bf16.msra.mxu1 %v7325_v35  ;;  %5984 = vmatprep.mubr.msk.f32.mxu1 %vm6598_vm5, %v6594_v1 }
 0x350   : > { %6247 = vmatprep.subr.bf16.mxu1 %v6597_v39 }
 0x352   : > { %5985 = vmatmul.mubr.f32.gmra.mrb[2].mxu1 %v2078_v42 }
 0x353   : > { %5987 = vmatprep.mubr.msk.f32.mxu1 %vm6598_vm5, %v6594_v1 }
 0x356   : > { %5988 = vmatmul.mubr.f32.gmra.mrb[4].mxu1 %v2088_v21 }
 0x357   : > { %5990 = vmatprep.mubr.msk.f32.mxu1 %vm6598_vm5, %v6594_v1 }
 0x35a   : > { %5991 = vmatmul.mubr.f32.gmra.mrb[6].mxu1 %v2098_v2 }
 0x35b   : > { %5993 = vmatprep.mubr.msk.f32.mxu1 %vm6598_vm5, %v6594_v1 }
 0x35e   : > { %5994 = vmatmul.mubr.f32.gmra.mrb[8].mxu1 %v2108_v8 }
 0x35f   : > { %6000 = vmatprep.mubr.msk.f32.mxu1 %vm6598_vm5, %v6594_v1 }
 0x362   : > { %6001 = vmatmul.mubr.f32.vlgmr.msra.gmra.mrb[0].mxu1 %v7443_v47 }
 0x363   : > { %6249 = vmatpush3.bf16.msk.msra.mxu1 %vm7305_vm6, %v6593_v62  ;;  %6003 = vmatprep.mubr.msk.f32.mxu1 %vm6598_vm5, %v6594_v1  ;;  %vm4617_vm6 = vcmask 18432  }
 0x366   : > { %6004 = vmatmul.mubr.f32.gmra.mrb[2].mxu1 %v7460_v61 }
 0x367   : > { %6006 = vmatprep.mubr.msk.f32.mxu1 %vm6598_vm5, %v6594_v1 }
 0x36a   : > { %6007 = vmatmul.mubr.f32.gmra.mrb[4].mxu1 %v7463_v31 }
 0x36b   : > { %6009 = vmatprep.mubr.msk.f32.mxu1 %vm6598_vm5, %v6594_v1 }
 0x36e   : > { %6010 = vmatmul.mubr.f32.gmra.mrb[6].mxu1 %v7469_v33 }
 0x36f   : > { %6012 = vmatprep.mubr.msk.f32.mxu1 %vm6598_vm5, %v6594_v1 }
 0x372   : > { %6013 = vmatmul.mubr.f32.gmra.mrb[8].mxu1 %v7472_v43 }
 0x373   : > { %6019 = vmatprep.mubr.msk.f32.mxu1 %vm6598_vm5, %v6594_v1 }
 0x376   : > { %6020 = vmatmul.mubr.f32.vlgmr.msra.gmra.mrb[0].mxu1 %v7443_v47 }
 0x377   : > { %6022 = vmatprep.mubr.msk.f32.mxu1 %vm6598_vm5, %v6594_v1 }
 0x37a   : > { %6023 = vmatmul.mubr.f32.gmra.mrb[2].mxu1 %v7460_v61 }
 0x37b   : > { %6025 = vmatprep.mubr.msk.f32.mxu1 %vm6598_vm5, %v6594_v1 }
 0x37e   : > { %6026 = vmatmul.mubr.f32.gmra.mrb[4].mxu1 %v7463_v31 }
 0x37f   : > { %6028 = vmatprep.mubr.msk.f32.mxu1 %vm6598_vm5, %v6594_v1 }
 0x382   : > { %6029 = vmatmul.mubr.f32.gmra.mrb[6].mxu1 %v7469_v33 }
 0x383   : > { %6031 = vmatprep.mubr.msk.f32.mxu1 %vm6598_vm5, %v6594_v1 }
 0x386   : > { %6032 = vmatmul.mubr.f32.gmra.mrb[8].mxu1 %v7472_v43 }
 0x449   : > { %v2602_v62 = vpop.f32.mrb[0].mxu1 }
 0x44a   : > { %v2635_v39 = vcombine.high %v2602_v62, %v2602_v62  ;;  %v2642_v49 = vrot.slane %v2602_v62, %v7328_v20  ;;  %v6021_v51 = vpop.f32.mrb[1].mxu1 }
 0x44c   : > { %v2649_v48 = vrot.slane %v2635_v39, %v7328_v20  ;;  %v2650_v11 = vcombine.high %v2642_v49, %v2642_v49  ;;  %v2658_v23 = vrot.slane %v2642_v49, %v7328_v20 }
 0x44d   : > { %v2608_v35 = vpop.f32.mrb[2].mxu1 }
 0x44e   : > { %v2651_v18 = vcombine.high %v2649_v48, %v2649_v48  ;;  %v2672_v7 = vrot.slane %v2650_v11, %v7328_v20  ;;  %v2684_v9 = vcombine.high %v2608_v35, %v2608_v35  ;;  %v6024_v38 = vpop.f32.mrb[3].mxu1  ;;  %v2665_v44 = vrot.slane %v2649_v48, %v7328_v20 }
 0x44f   : > { %v2691_v16 = vrot.slane %v2608_v35, %v7328_v20 }
 0x450   : > { %v2679_v47 = vrot.slane %v2651_v18, %v7328_v20  ;;  %v2855_v29 = vcombine.low %v2658_v23, %v2672_v7  ;;  %v5509_v41 = vcombine.high %v2658_v23, %v2672_v7  ;;  %v2698_v30 = vrot.slane %v2684_v9, %v7328_v20 }
 0x451   : > { %v2699_v0 = vcombine.high %v2691_v16, %v2691_v16  ;;  %v2707_v17 = vrot.slane %v2691_v16, %v7328_v20  ;;  %v2614_v22 = vpop.f32.mrb[4].mxu1 }
 0x452   : > { %v2857_v63 = vcombine.low %v2665_v44, %v2679_v47  ;;  %v5510_v50 = vcombine.high %v2665_v44, %v2679_v47  ;;  %v2865_v60 = vrot.slane %v2855_v29, %v7328_v20  ;;  %v2872_v5 = vrot.slane %v5509_v41, %v7328_v20  ;;  %v6027_v6 = vpop.f32.mrb[5].mxu1 }
 0x453   : > { %v2700_v25 = vcombine.high %v2698_v30, %v2698_v30  ;;  %v2714_v4 = vrot.slane %v2698_v30, %v7328_v20  ;;  %v2721_v14 = vrot.slane %v2699_v0, %v7328_v20  ;;  %v2729_v15 = vcombine.high %v2707_v17, %v2707_v17 }
 0x454   : > { %v2879_v54 = vrot.slane %v2857_v63, %v7328_v20  ;;  %v2886_v19 = vrot.slane %v5510_v50, %v7328_v20  ;;  %v2887_v61 = vcombine.low %v2865_v60, %v2872_v5  ;;  %v2910_v3 = vrot.slane %v2707_v17, %v7328_v20 }
 0x455   : > { %v2728_v10 = vrot.slane %v2700_v25, %v7328_v20  ;;  %v2730_v31 = vcombine.high %v2714_v4, %v2714_v4  ;;  %v2731_v37 = vcombine.high %v2721_v14, %v2721_v14  ;;  %v2918_v13 = vcombine.low %v2721_v14, %v2729_v15  ;;  %v2620_v27 = vpop.f32.mrb[6].mxu1 }
 0x456   : > { %v2888_v55 = vcombine.low %v2879_v54, %v2886_v19  ;;  %v2917_v32 = vrot.slane %v2910_v3, %v7328_v20  ;;  %v2733_v33 = vcombine.high %v2614_v22, %v2614_v22  ;;  %v6030_v36 = vpop.f32.mrb[7].mxu1  ;;  %v2895_v42 = vrot.slane %v2887_v61, %v7328_v20 }
 0x457   : > { %v2919_v43 = vcombine.low %v2731_v37, %v2714_v4  ;;  %v2920_v21 = vcombine.low %v2728_v10, %v2730_v31  ;;  %v2732_v46 = vcombine.high %v2728_v10, %v2728_v10  ;;  %v2740_v53 = vrot.slane %v2614_v22, %v7328_v20 }
 0x458   : > { %v2902_v52 = vrot.slane %v2888_v55, %v7328_v20  ;;  %3118 = vst.msk [vmem:[%s7591_s7 + $0x8] sm:$0x1] %vm3117_vm9, %v2917_v32  ;;  %v2747_v2 = vrot.slane %v2733_v33, %v7328_v20  ;;  %v2782_v12 = vcombine.high %v2620_v27, %v2620_v27  ;;  %v2928_v45 = vrot.slane %v2918_v13, %v7328_v20 }
 0x459   : > { %v2935_v28 = vrot.slane %v2919_v43, %v7328_v20  ;;  %v2789_v24 = vrot.slane %v2620_v27, %v7328_v20  ;;  %v2626_v8 = vpop.f32.mrb[8].mxu1  ;;  %v2748_v40 = vcombine.high %v2740_v53, %v2740_v53  ;;  %v2756_v62 = vrot.slane %v2740_v53, %v7328_v20 }
 0x45a   : > { %v2903_v56 = vcombine.low %v2895_v42, %v2902_v52  ;;  %v2749_v26 = vcombine.high %v2747_v2, %v2747_v2  ;;  %v6033_v39 = vpop.f32.mrb[9].mxu1  ;;  %v2763_v49 = vrot.slane %v2747_v2, %v7328_v20  ;;  %v2942_v51 = vrot.slane %v2920_v21, %v7328_v20 }
 0x45b   : > { %v2796_v48 = vrot.slane %v2782_v12, %v7328_v20  ;;  %v2797_v11 = vcombine.high %v2789_v24, %v2789_v24  ;;  %v2770_v35 = vrot.slane %v2748_v40, %v7328_v20  ;;  %v2921_v23 = vcombine.low %v2732_v46, %v2756_v62 }
 0x45c   : > { %3116 = vst.msk [vmem:[%s7591_s7] sm:$0xff] %vm3115_vm10, %v2903_v56  ;;  %v2777_v18 = vrot.slane %v2749_v26, %v7328_v20  ;;  %v2805_v7 = vrot.slane %v2789_v24, %v7328_v20  ;;  %v2950_v9 = vcombine.low %v2928_v45, %v2935_v28  ;;  %v2837_v13 = vrot.slane %v2626_v8, %v7328_v20 }
 0x45d   : > { %v2798_v38 = vcombine.high %v2796_v48, %v2796_v48  ;;  %v2812_v44 = vrot.slane %v2796_v48, %v7328_v20  ;;  %v2819_v16 = vrot.slane %v2797_v11, %v7328_v20  ;;  %v2949_v47 = vrot.slane %v2921_v23, %v7328_v20 }
 0x45e   : > { %v2973_v29 = vrot.slane %v2770_v35, %v7328_v20  ;;  %v5511_v41 = vcombine.high %v2756_v62, %v2770_v35  ;;  %v2982_v30 = vcombine.low %v2763_v49, %v2777_v18  ;;  %v5512_v0 = vcombine.high %v2763_v49, %v2777_v18 }
 0x45f   : > { %v2826_v17 = vrot.slane %v2798_v38, %v7328_v20  ;;  %v2827_v22 = vcombine.high %v2805_v7, %v2805_v7  ;;  %v2828_v63 = vcombine.high %v2812_v44, %v2812_v44  ;;  %v2951_v50 = vcombine.low %v2942_v51, %v2949_v47 }
 0x460   : > { %v2980_v60 = vrot.slane %v2973_v29, %v7328_v20  ;;  %v2991_v5 = vrot.slane %v5511_v41, %v7328_v20  ;;  %v2998_v6 = vrot.slane %v2982_v30, %v7328_v20  ;;  %v2958_v25 = vrot.slane %v2950_v9, %v7328_v20 }
 0x461   : > { %v2829_v4 = vcombine.high %v2819_v16, %v2819_v16  ;;  %v2984_v14 = vcombine.low %v2805_v7, %v2819_v16  ;;  %v3036_v15 = vrot.slane %v2827_v22, %v7328_v20  ;;  %v2965_v54 = vrot.slane %v2951_v50, %v7328_v20 }
 0x462   : > { %v3005_v19 = vrot.slane %v5512_v0, %v7328_v20  ;;  %v3013_v61 = vcombine.low %v2991_v5, %v2998_v6  ;;  %3120 = vst.msk [vmem:[%s7591_s7 + $0x18] sm:$0x1] %vm3117_vm9, %v2980_v60  ;;  %v3045_v3 = vcombine.low %v2826_v17, %v2828_v63  ;;  %v2830_v33 = vcombine.high %v2826_v17, %v2826_v17 }
 0x463   : > { %v3012_v10 = vrot.slane %v2984_v14, %v7328_v20  ;;  %v3043_v31 = vrot.slane %v3036_v15, %v7328_v20  ;;  %v3044_v37 = vcombine.low %v2829_v4, %v2812_v44  ;;  %v3125_v27 = vld [vmem:[%s7591_s7] ss:$2 sm:$0xf]  ;;  %v5516_v55 = vld [vmem:[%s7591_s7 + $0x1] ss:$2 sm:$0xf]  ;;  %v2966_v32 = vcombine.low %v2958_v25, %v2965_v54 }
 0x464   : > { %v7632_v36 = vmax.f32 %v3125_v27, %v5516_v55  ;;  %v2838_v43 = vcombine.high %v2837_v13, %v2837_v13  ;;  %v2845_v21 = vrot.slane %v2837_v13, %v7328_v20  ;;  %v3021_v46 = vrot.slane %v3013_v61, %v7328_v20 }
 0x465   : > { %v3014_v42 = vcombine.low %v3005_v19, %v3012_v10  ;;  %3122 = vst.msk [vmem:[%s7591_s7 + $0x28] sm:$0x1] %vm3117_vm9, %v3043_v31  ;;  %v3061_v52 = vrot.slane %v3045_v3, %v7328_v20  ;;  %v3054_v2 = vrot.slane %v3044_v37, %v7328_v20  ;;  %v7654_v24 = vsel %vm3169_vm11, 1.0, %v6594_v1 }
 0x466   : > { %3119 = vst.msk [vmem:[%s7591_s7 + $0x10] sm:$0xff] %vm3115_vm10, %v2966_v32  ;;  %3148 = vrot.lane.b32.xlu0 %v7632_v36, %s6592_s27  ;;  %v2852_v12 = vrot.slane %v2838_v43, %v7328_v20  ;;  %v2853_v45 = vcombine.high %v2845_v21, %v2845_v21  ;;  %v3046_v28 = vcombine.low %v2830_v33, %v2845_v21  ;;  %v5521_v8 = vsel %vm3170_vm12, 1.0, %v6594_v1 }
 0x467   : > { %v3028_v53 = vrot.slane %v3014_v42, %v7328_v20  ;;  %v3186_v62 = vsel %vm1441_vm1, %v5521_v8, 0  ;;  %v3277_v39 = vsub.f32 %v7654_v24, %v7654_v24  ;;  %v3076_v49 = vcombine.low %v3054_v2, %v3061_v52 }
 0x468   : > { %v2854_v59 = vcombine.high %v2852_v12, %v2852_v12  ;;  %v3047_v40 = vcombine.low %v2852_v12, %v2853_v45  ;;  %v3068_v26 = vrot.slane %v3046_v28, %v7328_v20  ;;  %v3284_v11 = vsub.f32 %v3186_v62, %v3186_v62 }
 0x469   : > { %v3029_v56 = vcombine.low %v3021_v46, %v3028_v53  ;;  %v3278_v35 = vand.u32 4294901760, %v3277_v39  ;;  %v3084_v47 = vrot.slane %v3076_v49, %v7328_v20  ;;  %v6600_v5 = vmov 1.0  }
 0x46a   : > { %v3075_v51 = vrot.slane %v3047_v40, %v7328_v20  ;;  %v3099_v48 = vrot.slane %v2854_v59, %v7328_v20  ;;  %v3285_v16 = vand.u32 4294901760, %v3284_v11  ;;  %v6250_v6 = vpack.c.bf16 %v5521_v8, %v6600_v5 }
 0x46b   : > { %3121 = vst.msk [vmem:[%s7591_s7 + $0x20] sm:$0xff] %vm3115_vm10, %v3029_v56  ;;  %v3279_v44 = vsub.f32 %v3277_v39, %v3278_v35  ;;  %v6260_v14 = vpack.c.bf16 %v3284_v11, %v3277_v39  ;;  %vm4677_vm11 = vcmask 1043459   ;;  %vm4679_vm12 = vcmask 23552  }
 0x46c   : > { %v3077_v18 = vcombine.low %v3068_v26, %v3075_v51  ;;  %v3106_v23 = vrot.slane %v3099_v48, %v7328_v20  ;;  %v3286_v41 = vsub.f32 %v3284_v11, %v3285_v16  ;;  %6252 = vmatprep.subr.msk.bf16.mxu1 %vm7684_vm13, %v6250_v6  ;;  %v6270_v19 = vpack.c.bf16 %v3285_v16, %v3278_v35 }
 0x46d   : > { %v5513_v7 = vld [vmem:[%s7591_s7 + $0x10] ss:$2 sm:$0xf]  ;;  %v5517_v9 = vld [vmem:[%s7591_s7 + $0x11] ss:$2 sm:$0xf]  ;;  %6255 = vmatpush3.bf16.msk.msra.mxu1 %vm7684_vm13, %v6250_v6 }
 0x46e   : > { %v3141_v38 = vmax.f32 %v5513_v7, %v5517_v9  ;;  %v3091_v29 = vrot.slane %v3077_v18, %v7328_v20  ;;  %3124 = vst.msk [vmem:[%s7591_s7 + $0x38] sm:$0x1] %vm3117_vm9, %v3106_v23  ;;  %v3280_v0 = vand.u32 4294901760, %v3279_v44  ;;  %v3287_v50 = vand.u32 4294901760, %v3286_v41 }
 0x46f   : > { %vm4671_vm9 = vcmask 1041409  }
 0x470   : > { %3150 = vrot.lane.b32.xlu1 %v3141_v38, %s6592_s27  ;;  %v3092_v30 = vcombine.low %v3084_v47, %v3091_v29  ;;  %v6256_v60 = vpack.c.bf16 %v3287_v50, %v3280_v0 }
 0x472   : > { %v5514_v17 = vld [vmem:[%s7591_s7 + $0x20] ss:$2 sm:$0xf]  ;;  %v5518_v22 = vld [vmem:[%s7591_s7 + $0x21] ss:$2 sm:$0xf]  ;;  %6257 = vmatprep.subr.bf16.mxu0 %v6256_v60 }
 0x473   : > { %3123 = vst.msk [vmem:[%s7591_s7 + $0x30] sm:$0xff] %vm3115_vm10, %v3092_v30  ;;  %v3142_v63 = vmax.f32 %v5514_v17, %v5518_v22  ;;  %6259 = vmatpush3.bf16.msra.mxu0 %v6256_v60 }
 0x474   : > { %6261 = vmatprep.subr.bf16.mxu0 %v6260_v14 }
 0x475   : > { %3152 = vrot.lane.b32.xlu0 %v3142_v63, %s6592_s27 }
 0x47a   : > { %v5515_v25 = vld [vmem:[%s7591_s7 + $0x30] ss:$2 sm:$0xf]  ;;  %v5519_v4 = vld [vmem:[%s7591_s7 + $0x31] ss:$2 sm:$0xf] }
 0x47b   : > { %v3143_v15 = vmax.f32 %v5515_v25, %v5519_v4  ;;  %s6601_s7 = smov [#allocation6]  }
 0x47c   : > { %s6509_s8 = sshll.u32 %s6601_s7, 4  ;;  %s6510_s8 = int_to_ptr.vmem [resolvable:$false] %s6509_s8 }
 0x47d   : > { %3154 = vrot.lane.b32.xlu1 %v3143_v15, %s6592_s27  ;;  %s6511_s18 = scalar_lea.vmem %s6510_s8, 512 }
 0x4d8   : > { %v3149_v61 = vpop.permute.xlu0 %3148 }
 0x4d9   : > { %v3161_v3 = vsel %vm3160_vm14, %v3149_v61, %v7632_v36 }
 0x4da   : > { %v3165_v37 = vmax.f32 %v7632_v36, %v3161_v3 }
 0x4e2   : > { %v3151_v10 = vpop.permute.xlu1 %3150 }
 0x4e3   : > { %v3162_v31 = vsel %vm3160_vm14, %v3151_v10, %v3141_v38 }
 0x4e4   : > { %v3166_v13 = vmax.f32 %v3141_v38, %v3162_v31 }
 0x4e6   : > { %v3179_v27 = vcombine.low %v3165_v37, %v3166_v13  ;;  %v3775_v37 = vsel %vm3774_vm0, %v7294_v34, 3 }
 0x4e7   : > { %v3153_v33 = vpop.permute.xlu0 %3152  ;;  %vm3776_vm3 = vcmp.eq.s32.totalorder %v6815_v57, %v3775_v37 }
 0x4e8   : > { %v3181_v55 = vsel %vm3115_vm10, %v3179_v27, 0  ;;  %v3163_v21 = vsel %vm3160_vm14, %v3153_v33, %v3142_v63  ;;  %v7747_v13 = vsel %vm3776_vm3, 1.0, %v6594_v1 }
 0x4e9   : > { %v3255_v32 = vand.u32 4294901760, %v3181_v55  ;;  %v3167_v2 = vmax.f32 %v3142_v63, %v3163_v21  ;;  %6076 = vmatprep.subr.msk.mxu1 %vm3953_vm2, %v7747_v13  ;;  %v3955_v27 = vsel %vm3953_vm2, %v7747_v13, 0 }
 0x4eb   : > { %6045 = vmatprep.mubr.f32.mxu0 %v3255_v32  ;;  %v3256_v42 = vsub.f32 %v3181_v55, %v3255_v32  ;;  %v7755_v55 = vsub.f32 %v3955_v27, %v3955_v27 }
 0x4ed   : > { %v3257_v43 = vand.u32 4294901760, %v3256_v42 }
 0x4ef   : > { %v3155_v46 = vpop.permute.xlu1 %3154  ;;  %v3258_v52 = vsub.f32 %v3256_v42, %v3257_v43 }
 0x4f0   : > { %v3164_v53 = vsel %vm3160_vm14, %v3155_v46, %v3143_v15 }
 0x4f1   : > { %v3168_v12 = vmax.f32 %v3143_v15, %v3164_v53  ;;  %v3259_v45 = vand.u32 4294901760, %v3258_v52 }
 0x4f3   : > { %v3180_v28 = vcombine.low %v3167_v2, %v3168_v12  ;;  %6038 = vmatprep.mubr.f32.mxu1 %v3259_v45 }
 0x4f5   : > { %v3183_v36 = vsel %vm3115_vm10, %v3180_v28, 0  ;;  %vm4674_vm10 = vcmask 1042434  }
 0x4f6   : > { %v3265_v8 = vand.u32 4294901760, %v3183_v36 }
 0x4f8   : > { %v3266_v56 = vsub.f32 %v3183_v36, %v3265_v8  ;;  %6046 = vmatmul.mubr.f32.vlgmr.msra.gmra.mrb[8].mxu0 %v3265_v8 }
 0x4f9   : > { %6263 = vmatpush3.bf16.msra.mxu0 %v6260_v14  ;;  %6052 = vmatprep.mubr.f32.mxu0 %v3256_v42 }
 0x4fa   : > { %v3267_v59 = vand.u32 4294901760, %v3266_v56  ;;  %6266 = vmatprep.subr.msk.bf16.mxu0 %vm7684_vm13, %v6250_v6 }
 0x4fc   : > { %v3268_v40 = vsub.f32 %v3266_v56, %v3267_v59 }
 0x4fe   : > { %v3269_v26 = vand.u32 4294901760, %v3268_v40 }
 0x500   : > { %6039 = vmatmul.mubr.f32.vlgmr.msra.gmra.mrb[10].mxu1 %v3269_v26  ;;  %6053 = vmatmul.mubr.f32.vlgmr.msra.gmra.mrb[8].mxu0 %v3266_v56 }
 0x501   : > { %6269 = vmatpush3.bf16.msk.msra.mxu0 %vm7684_vm13, %v6250_v6  ;;  %6059 = vmatprep.mubr.f32.mxu0 %v3257_v43 }
 0x502   : > { %6271 = vmatprep.subr.bf16.mxu0 %v6270_v19  ;;  %6077 = vmatpush3.msk.msra.mxu1 %vm3953_vm2, %v7747_v13 }
 0x508   : > { %6060 = vmatmul.mubr.f32.vlgmr.msra.gmra.mrb[8].mxu0 %v3267_v59 }
 0x509   : > { %6273 = vmatpush3.bf16.msra.mxu0 %v6270_v19  ;;  %6066 = vmatprep.mubr.f32.mxu0 %v3255_v32 }
 0x50a   : > { %6276 = vmatprep.subr.msk.bf16.mxu0 %vm7684_vm13, %v6250_v6 }
 0x510   : > { %6067 = vmatmul.mubr.f32.vlgmr.msra.gmra.mrb[8].mxu0 %v3265_v8 }
 0x511   : > { %6279 = vmatpush3.bf16.msk.msra.mxu0 %vm7684_vm13, %v6250_v6  ;;  %6073 = vmatprep.mubr.f32.mxu0 %v3255_v32  ;;  %v7758_v32 = vand.u32 4294901760, %v7755_v55 }
 0x512   : > { %6106 = vmatprep.subr.mxu0 %v6594_v1 }
 0x513   : > { %v4047_v57 = vsub.f32 %v7755_v55, %v7758_v32 }
 0x515   : > { %v7762_v34 = vand.u32 4294901760, %v4047_v57 }
 0x517   : > { %6081 = vmatprep.subr.mxu1 %v7762_v34 }
 0x518   : > { %6074 = vmatmul.mubr.f32.vlgmr.msra.gmra.mrb[8].mxu0 %v3265_v8 }
 0x519   : > { %6108 = vmatprep.mubr.msk.f32.mxu0 %vm6598_vm5, %v6594_v1 }
 0x5d3   : > { %v6040_v62 = vpop.f32.mrb[10].mxu1 }
 0x5d4   : > { %v3261_v39 = vpop.f32.mrb[11].mxu1 }
 0x5eb   : > { %v6075_v49 = vpop.f32.mrb[8].mxu0 }
 0x5ec   : > { %v6280_v51 = vadd.f32 %v6075_v49, %v6040_v62  ;;  %v3680_v48 = vpop.f32.mrb[9].mxu0 }
 0x5ed   : > { %v6281_v11 = vadd.f32 %v3680_v48, %v3261_v39 }
 0x5ee   : > { %v3693_v35 = vcombine.high %v6280_v51, %v6280_v51  ;;  %3699 = vst.msk [vmem:[%s7713_s9 + $0x8] sm:$0xf] %vm3696_vm15, %v6280_v51 }
 0x5ef   : > { %v3692_v18 = vcombine.high %v6281_v11, %v6281_v11  ;;  %3697 = vst.msk [vmem:[%s7713_s9] sm:$0xf] %vm3696_vm15, %v6281_v11 }
 0x5f0   : > { %3700 = vst.msk [vmem:[%s7713_s9 + $0xc] sm:$0xf] %vm3696_vm15, %v3693_v35 }
 0x5f1   : > { %3698 = vst.msk [vmem:[%s7713_s9 + $0x4] sm:$0xf] %vm3696_vm15, %v3692_v18 }
 0x5f5   : > { %v5530_v23 = vld [vmem:[%s7713_s9 + $0x9] ss:$2 sm:$0x3]  ;;  %v5534_v38 = vld [vmem:[%s7713_s9 + $0xa] ss:$2 sm:$0x1] }
 0x5f6   : > { %v5528_v7 = vld [vmem:[%s7713_s9 + $0x1] ss:$2 sm:$0x3]  ;;  %v5532_v9 = vld [vmem:[%s7713_s9 + $0x2] ss:$2 sm:$0x1]  ;;  %v3723_v47 = vmax.f32 %v5530_v23, %v5534_v38 }
 0x5f7   : > { %v3721_v44 = vmax.f32 %v5528_v7, %v5532_v9  ;;  %v5531_v17 = vld [vmem:[%s7713_s9 + $0xd] ss:$2 sm:$0x3]  ;;  %v5535_v22 = vld [vmem:[%s7713_s9 + $0xe] ss:$2 sm:$0x1] }
 0x5f8   : > { %v5529_v16 = vld [vmem:[%s7713_s9 + $0x5] ss:$2 sm:$0x3]  ;;  %v5533_v29 = vld [vmem:[%s7713_s9 + $0x6] ss:$2 sm:$0x1]  ;;  %v3727_v0 = vsel %vm1441_vm1, %v3723_v47, %v5530_v23  ;;  %v3724_v50 = vmax.f32 %v5531_v17, %v5535_v22 }
 0x5f9   : > { %v3725_v41 = vsel %vm1441_vm1, %v3721_v44, %v5528_v7  ;;  %v3722_v30 = vmax.f32 %v5529_v16, %v5533_v29  ;;  %v3701_v60 = vld [vmem:[%s7713_s9] sm:$0x1]  ;;  %v3735_v4 = vrot.slane %v3727_v0, 7  ;;  %v3702_v15 = vld [vmem:[%s7713_s9 + $0x4] sm:$0x1] }
 0x5fa   : > { %v3733_v63 = vrot.slane %v3725_v41, 7  ;;  %v3728_v14 = vsel %vm1441_vm1, %v3724_v50, %v5531_v17  ;;  %v3703_v61 = vld [vmem:[%s7713_s9 + $0x8] sm:$0x1]  ;;  %v3704_v10 = vld [vmem:[%s7713_s9 + $0xc] sm:$0x1] }
 0x5fb   : > { %v3726_v5 = vsel %vm1441_vm1, %v3722_v30, %v5529_v16  ;;  %v3736_v19 = vrot.slane %v3728_v14, 7  ;;  %v3743_v3 = vsel %vm1441_vm1, %v3703_v61, %v3735_v4 }
 0x5fc   : > { %v3741_v6 = vsel %vm1441_vm1, %v3701_v60, %v3733_v63  ;;  %v3734_v25 = vrot.slane %v3726_v5, 7 }
 0x5fd   : > { %3749 = vrot.lane.b32.xlu0 %v3741_v6, %s6596_s12  ;;  %v3744_v31 = vsel %vm1441_vm1, %v3704_v10, %v3736_v19 }
 0x5fe   : > { %v3742_v54 = vsel %vm1441_vm1, %v3702_v15, %v3734_v25  ;;  %vm3769_vm1 = vcmp.eq.s32.totalorder %v6817_v58, 3 }
 0x5ff   : > { %3751 = vrot.lane.b32.xlu1 %v3742_v54, %s6596_s12 }
 0x601   : > { %3753 = vrot.lane.b32.xlu0 %v3743_v3, %s6596_s12 }
 0x603   : > { %3755 = vrot.lane.b32.xlu1 %v3744_v31, %s6596_s12 }
 0x66f   : > { %v3750_v33 = vpop.permute.xlu0 %3749 }
 0x670   : > { %v3761_v42 = vsel %vm1474_vm7, %v3741_v6, %v3750_v33 }
 0x671   : > { %v3765_v43 = vmax.f32 %v3741_v6, %v3761_v42  ;;  %v3752_v21 = vpop.permute.xlu1 %3751 }
 0x672   : > { %v3762_v46 = vsel %vm1474_vm7, %v3742_v54, %v3752_v21 }
 0x673   : > { %v3770_v52 = vsel %vm3769_vm1, %v3741_v6, %v3765_v43  ;;  %v3766_v53 = vmax.f32 %v3742_v54, %v3762_v46  ;;  %v3754_v2 = vpop.permute.xlu0 %3753 }
 0x674   : > { %v3789_v12 = vrot.slane %v3770_v52, %v7328_v20  ;;  %v3763_v45 = vsel %vm1474_vm7, %v3743_v3, %v3754_v2 }
 0x675   : > { %v3771_v28 = vsel %vm3769_vm1, %v3742_v54, %v3766_v53  ;;  %v3767_v36 = vmax.f32 %v3743_v3, %v3763_v45  ;;  %v3756_v8 = vpop.permute.xlu1 %3755 }
 0x676   : > { %v3790_v56 = vcombine.high %v3789_v12, %v3789_v12  ;;  %v3797_v59 = vrot.slane %v3789_v12, %v7328_v20  ;;  %v3812_v40 = vrot.slane %v3771_v28, %v7328_v20  ;;  %v3764_v26 = vsel %vm1474_vm7, %v3744_v31, %v3756_v8 }
 0x677   : > { %v3772_v62 = vsel %vm3769_vm1, %v3743_v3, %v3767_v36  ;;  %v3768_v39 = vmax.f32 %v3744_v31, %v3764_v26  ;;  %vm4682_vm7 = vcmask 1042432  }
 0x678   : > { %v3804_v49 = vrot.slane %v3790_v56, %v7328_v20  ;;  %v3805_v51 = vcombine.high %v3797_v59, %v3797_v59  ;;  %v3813_v48 = vcombine.high %v3812_v40, %v3812_v40  ;;  %v3820_v11 = vrot.slane %v3812_v40, %v7328_v20  ;;  %6107 = vmatpush3.msk.msra.mxu0 %vm4682_vm7, %v7654_v24 }
 0x679   : > { %v3835_v35 = vrot.slane %v3772_v62, %v7328_v20  ;;  %v3773_v18 = vsel %vm3769_vm1, %v3744_v31, %v3768_v39  ;;  %6111 = vmatprep.subr.mxu0 %v6594_v1 }
 0x67a   : > { %v3875_v23 = vcombine.low %v3797_v59, %v3804_v49  ;;  %v3827_v7 = vrot.slane %v3813_v48, %v7328_v20  ;;  %v3828_v9 = vcombine.high %v3820_v11, %v3820_v11  ;;  %v3876_v38 = vcombine.low %v3805_v51, %v3820_v11 }
 0x67b   : > { %v3836_v44 = vcombine.high %v3835_v35, %v3835_v35  ;;  %v3843_v16 = vrot.slane %v3835_v35, %v7328_v20  ;;  %v3858_v47 = vrot.slane %v3773_v18, %v7328_v20 }
 0x67c   : > { %v3885_v29 = vrot.slane %v3875_v23, %v7328_v20  ;;  %v3877_v41 = vcombine.low %v3827_v7, %v3828_v9  ;;  %v3892_v30 = vrot.slane %v3876_v38, %v7328_v20 }
 0x67d   : > { %v3850_v0 = vrot.slane %v3836_v44, %v7328_v20  ;;  %v3851_v17 = vcombine.high %v3843_v16, %v3843_v16  ;;  %v3859_v58 = vcombine.high %v3858_v47, %v3858_v47  ;;  %v3866_v22 = vrot.slane %v3858_v47, %v7328_v20 }
 0x67e   : > { %v3899_v6 = vrot.slane %v3877_v41, %v7328_v20  ;;  %v3907_v14 = vcombine.low %v3885_v29, %v3892_v30 }
 0x67f   : > { %v3878_v63 = vcombine.low %v3843_v16, %v3850_v0  ;;  %v3873_v50 = vrot.slane %v3859_v58, %v7328_v20  ;;  %v3874_v60 = vcombine.high %v3866_v22, %v3866_v22  ;;  %v3924_v5 = vcombine.low %v3851_v17, %v3866_v22 }
 0x680   : > { %v3915_v61 = vrot.slane %v3907_v14, %v7328_v20 }
 0x681   : > { %v3906_v25 = vrot.slane %v3878_v63, %v7328_v20  ;;  %v3925_v4 = vcombine.low %v3873_v50, %v3874_v60  ;;  %v3932_v15 = vrot.slane %v3924_v5, %v7328_v20 }
 0x683   : > { %v3939_v54 = vrot.slane %v3925_v4, %v7328_v20  ;;  %v3908_v19 = vcombine.low %v3899_v6, %v3906_v25 }
 0x685   : > { %v3922_v3 = vrot.slane %v3908_v19, %v7328_v20  ;;  %v3940_v10 = vcombine.low %v3932_v15, %v3939_v54 }
 0x687   : > { %v3923_v31 = vcombine.low %v3915_v61, %v3922_v3  ;;  %v3947_v37 = vrot.slane %v3940_v10, %v7328_v20 }
 0x689   : > { %v3949_v27 = vsel %vm3948_vm4, %v3923_v31, 0  ;;  %v3951_v57 = vsel %vm3948_vm4, %v3947_v37, 0 }
 0x68a   : > { %v4023_v33 = vand.u32 4294901760, %v3949_v27  ;;  %v4033_v42 = vand.u32 4294901760, %v3951_v57 }
 0x68c   : > { %v4024_v43 = vsub.f32 %v3949_v27, %v4023_v33  ;;  %v4034_v21 = vsub.f32 %v3951_v57, %v4033_v42 }
 0x68e   : > { %v4025_v46 = vand.u32 4294901760, %v4024_v43  ;;  %v4035_v52 = vand.u32 4294901760, %v4034_v21 }
 0x690   : > { %v4026_v53 = vsub.f32 %v4024_v43, %v4025_v46  ;;  %v4036_v2 = vsub.f32 %v4034_v21, %v4035_v52 }
 0x692   : > { %v4027_v12 = vand.u32 4294901760, %v4026_v53  ;;  %v4037_v45 = vand.u32 4294901760, %v4036_v2 }
 0x694   : > { %6078 = vmatprep.mubr.f32.mxu1 %v4027_v12 }
 0x695   : > { %6079 = vmatmul.mubr.f32.vlgmr.msra.gmra.mrb[12].mxu1 %v4037_v45  ;;  %v4684_v45 = vsel %vm4682_vm7, %v7654_v24, 0 }
 0x696   : > { %6082 = vmatpush3.msra.mxu1 %v7762_v34  ;;  %6083 = vmatprep.mubr.f32.mxu1 %v4023_v33 }
 0x697   : > { %6086 = vmatprep.subr.mxu1 %v7755_v55 }
 0x69d   : > { %6084 = vmatmul.mubr.f32.vlgmr.msra.gmra.mrb[12].mxu1 %v4033_v42 }
 0x69e   : > { %6087 = vmatpush3.msra.mxu1 %v7755_v55  ;;  %6088 = vmatprep.mubr.f32.mxu1 %v4024_v43 }
 0x69f   : > { %6091 = vmatprep.subr.msk.mxu1 %vm3953_vm2, %v7747_v13 }
 0x6a5   : > { %6089 = vmatmul.mubr.f32.vlgmr.msra.gmra.mrb[12].mxu1 %v4034_v21 }
 0x6a6   : > { %6092 = vmatpush3.msk.msra.mxu1 %vm3953_vm2, %v7747_v13  ;;  %6093 = vmatprep.mubr.f32.mxu1 %v4025_v46 }
 0x6a7   : > { %6096 = vmatprep.subr.mxu1 %v7758_v32 }
 0x6ad   : > { %6094 = vmatmul.mubr.f32.vlgmr.msra.gmra.mrb[12].mxu1 %v4035_v52 }
 0x6ae   : > { %6097 = vmatpush3.msra.mxu1 %v7758_v32  ;;  %6098 = vmatprep.mubr.f32.mxu1 %v4023_v33 }
 0x6af   : > { %6101 = vmatprep.subr.msk.mxu1 %vm3953_vm2, %v7747_v13 }
 0x6b5   : > { %6099 = vmatmul.mubr.f32.vlgmr.msra.gmra.mrb[12].mxu1 %v4033_v42 }
 0x6b6   : > { %6102 = vmatpush3.msk.msra.mxu1 %vm3953_vm2, %v7747_v13  ;;  %6103 = vmatprep.mubr.f32.mxu1 %v4023_v33 }
 0x6bd   : > { %6104 = vmatmul.mubr.f32.vlgmr.msra.gmra.mrb[12].mxu1 %v4033_v42 }
 0x790   : > { %v6105_v55 = vpop.f32.mrb[12].mxu1 }
 0x791   : > { %v4503_v34 = vrot.slane %v6105_v55, %v7328_v20  ;;  %v4436_v28 = vpop.f32.mrb[13].mxu1 }
 0x792   : > { %v4448_v36 = vcombine.high %v4436_v28, %v4436_v28  ;;  %v4455_v8 = vrot.slane %v4436_v28, %v7328_v20 }
 0x793   : > { %v4504_v56 = vcombine.high %v4503_v34, %v4503_v34  ;;  %v4511_v32 = vrot.slane %v4503_v34, %v7328_v20 }
 0x794   : > { %v4462_v59 = vrot.slane %v4448_v36, %v7328_v20  ;;  %v4463_v40 = vcombine.high %v4455_v8, %v4455_v8  ;;  %v4471_v26 = vrot.slane %v4455_v8, %v7328_v20 }
 0x795   : > { %v4518_v13 = vrot.slane %v4504_v56, %v7328_v20  ;;  %v4519_v62 = vcombine.high %v4511_v32, %v4511_v32  ;;  %v4581_v41 = vrot.slane %v4511_v32, %v7328_v20  ;;  %v4764_v32 = vsub.f32 %v4684_v45, %v4684_v45 }
 0x796   : > { %v4464_v39 = vcombine.high %v4462_v59, %v4462_v59  ;;  %v4485_v49 = vrot.slane %v4463_v40, %v7328_v20  ;;  %v4493_v51 = vcombine.high %v4471_v26, %v4471_v26  ;;  %v4478_v35 = vrot.slane %v4462_v59, %v7328_v20 }
 0x797   : > { %v4520_v48 = vcombine.high %v4518_v13, %v4518_v13  ;;  %v4590_v11 = vcombine.low %v4518_v13, %v4519_v62  ;;  %v4765_v62 = vand.u32 4294901760, %v4764_v32 }
 0x798   : > { %v4492_v18 = vrot.slane %v4464_v39, %v7328_v20  ;;  %v4495_v23 = vcombine.high %v4485_v49, %v4485_v49  ;;  %v4521_v7 = vcombine.low %v4471_v26, %v4485_v49  ;;  %v4535_v16 = vrot.slane %v4493_v51, %v7328_v20 }
 0x799   : > { %v4597_v9 = vrot.slane %v4590_v11, %v7328_v20  ;;  %v4604_v38 = vrot.slane %v4520_v48, %v7328_v20  ;;  %v4766_v51 = vsub.f32 %v4764_v32, %v4765_v62 }
 0x79a   : > { %v4528_v44 = vrot.slane %v4521_v7, %v7328_v20  ;;  %v4544_v47 = vcombine.low %v4495_v23, %v4478_v35  ;;  %v5540_v29 = vcombine.high %v4478_v35, %v4492_v18  ;;  %v4558_v58 = vrot.slane %v4492_v18, %v7328_v20 }
 0x79b   : > { %v4605_v30 = vcombine.low %v4597_v9, %v4604_v38  ;;  %v4767_v35 = vand.u32 4294901760, %v4766_v51 }
 0x79c   : > { %v4536_v0 = vcombine.low %v4528_v44, %v4535_v16  ;;  %v4551_v17 = vrot.slane %v4544_v47, %v7328_v20  ;;  %v4574_v22 = vrot.slane %v5540_v29, %v7328_v20 }
 0x79d   : > { %v4612_v63 = vrot.slane %v4605_v30, %v7328_v20 }
 0x79e   : > { %v4543_v50 = vrot.slane %v4536_v0, %v7328_v20  ;;  %v4559_v60 = vcombine.low %v4551_v17, %v4558_v58  ;;  %v4582_v5 = vcombine.low %v4574_v22, %v4581_v41 }
 0x79f   : > { %4621 = vst.msk [vmem:[%s296_s25 + $0xc] sm:$0x7] %vm4617_vm6, %v4612_v63 }
 0x7a0   : > { %v4566_v6 = vrot.slane %v4559_v60, %v7328_v20  ;;  %v4589_v25 = vrot.slane %v4582_v5, %v7328_v20  ;;  %4618 = vst.msk [vmem:[%s296_s25] sm:$0x7] %vm4617_vm6, %v4543_v50 }
 0x7a2   : > { %4619 = vst.msk [vmem:[%s296_s25 + $0x4] sm:$0x7] %vm4617_vm6, %v4566_v6  ;;  %4620 = vst.msk [vmem:[%s296_s25 + $0x8] sm:$0x7] %vm4617_vm6, %v4589_v25 }
 0x7a6   : > { %v5543_v15 = vld [vmem:[%s296_s25 + $0xc] ss:$2 sm:$0x1]  ;;  %v5547_v10 = vld [vmem:[%s296_s25 + $0xd] ss:$2 sm:$0x1] }
 0x7a7   : > { %v4622_v31 = vld [vmem:[%s296_s25] ss:$2 sm:$0x1]  ;;  %v5544_v37 = vld [vmem:[%s296_s25 + $0x1] ss:$2 sm:$0x1]  ;;  %v4640_v27 = vmax.f32 %v5543_v15, %v5547_v10 }
 0x7a8   : > { %v4637_v57 = vmax.f32 %v4622_v31, %v5544_v37 }
 0x7a9   : > { %v5542_v4 = vld [vmem:[%s296_s25 + $0x8] ss:$2 sm:$0x1]  ;;  %v5546_v14 = vld [vmem:[%s296_s25 + $0x9] ss:$2 sm:$0x1] }
 0x7aa   : > { %v4639_v54 = vmax.f32 %v5542_v4, %v5546_v14  ;;  %v5541_v19 = vld [vmem:[%s296_s25 + $0x4] ss:$2 sm:$0x1]  ;;  %v5545_v61 = vld [vmem:[%s296_s25 + $0x5] ss:$2 sm:$0x1] }
 0x7ab   : > { %v4638_v3 = vmax.f32 %v5541_v19, %v5545_v61 }
 0x7ac   : > { %4649 = vrot.lane.b32.xlu1 %v4639_v54, %s6592_s27 }
 0x7ad   : > { %4647 = vrot.lane.b32.xlu0 %v4638_v3, %s6592_s27 }
 0x7b0   : > { %4651 = vrot.lane.b32.xlu1 %v4640_v27, %s6592_s27 }
 0x7b1   : > { %4645 = vrot.lane.b32.xlu0 %v4637_v57, %s6592_s27  ;;  %s5213_s27 = sshll.u32 %s7713_s9, 4  ;;  %s7871_s27 = int_to_ptr.vmem [resolvable:$true] %s5213_s27 }
 0x7b2   : > { %s6505_s5 = scalar_lea.vmem %s7871_s27, 256  ;;  %p6512_p13 = scmp.lt.s32.totalorder %s7871_s27, %s6510_s8 }
 0x7b3   : > { %p6506_p9 = scmp.ne.s32.totalorder %s7871_s27, %s6505_s5  ;;  %p6513_p2 = scmp.lt.s32.totalorder %s6511_s18, %s6505_s5 }
 0x7b5   : > { %p6507_p0 = pnand %p6506_p9, %p7951_p11  ;;  %p6514_p5 = por %p6513_p2, %p6512_p13 }
 0x7b7   : > { %p6508_p6 = pneg %p6507_p0 }
 0x7b9   : > { %p6515_p4 = pnand %p6514_p5, %p6508_p6 }
 0x81e   : > { %v4650_v33 = vpop.permute.xlu1 %4649 }
 0x81f   : > { %v4660_v42 = vsel %vm4657_vm8, %v4650_v33, %v4639_v54  ;;  %v4648_v43 = vpop.permute.xlu0 %4647 }
 0x820   : > { %v4659_v21 = vsel %vm4657_vm8, %v4648_v43, %v4638_v3  ;;  %v4664_v52 = vmax.f32 %v4639_v54, %v4660_v42 }
 0x821   : > { %v4663_v46 = vmax.f32 %v4638_v3, %v4659_v21 }
 0x822   : > { %v4652_v53 = vpop.permute.xlu1 %4651  ;;  %v4673_v8 = vrot.slane %v4664_v52, 6 }
 0x823   : > { %v4661_v2 = vsel %vm4657_vm8, %v4652_v53, %v4640_v27  ;;  %v4646_v12 = vpop.permute.xlu0 %4645  ;;  %v4670_v28 = vrot.slane %v4663_v46, 7 }
 0x824   : > { %v4665_v55 = vmax.f32 %v4640_v27, %v4661_v2  ;;  %v4658_v34 = vsel %vm4657_vm8, %v4646_v12, %v4637_v57 }
 0x825   : > { %v4662_v36 = vmax.f32 %v4637_v57, %v4658_v34 }
 0x826   : > { %v4676_v56 = vrot.slane %v4665_v55, 5 }
 0x827   : > { %v4672_v59 = vsel %vm4671_vm9, %v4670_v28, %v4662_v36 }
 0x828   : > { %v4675_v40 = vsel %vm4674_vm10, %v4673_v8, %v4672_v59 }
 0x829   : > { %v4678_v26 = vsel %vm4677_vm11, %v4676_v56, %v4675_v40 }
 0x82a   : > { %v4680_v13 = vsel %vm4679_vm12, %v4678_v26, 0 }
 0x82b   : > { %v4752_v39 = vand.u32 4294901760, %v4680_v13 }
 0x82d   : > { %v4753_v49 = vsub.f32 %v4680_v13, %v4752_v39 }
 0x82f   : > { %v4754_v48 = vand.u32 4294901760, %v4753_v49 }
 0x831   : > { %v4755_v11 = vsub.f32 %v4753_v49, %v4754_v48 }
 0x833   : > { %v4756_v18 = vand.u32 4294901760, %v4755_v11 }
 0x835   : > { %6109 = vmatmul.mubr.f32.vlgmr.msra.gmra.mrb[10].mxu0 %v4756_v18 }
 0x836   : > { %6112 = vmatpush3.msra.mxu0 %v4767_v35  ;;  %6113 = vmatprep.mubr.msk.f32.mxu0 %vm6598_vm5, %v6594_v1 }
 0x837   : > { %6116 = vmatprep.subr.mxu0 %v6594_v1 }
 0x83d   : > { %6114 = vmatmul.mubr.f32.vlgmr.msra.gmra.mrb[10].mxu0 %v4752_v39 }
 0x83e   : > { %6117 = vmatpush3.msra.mxu0 %v4764_v32  ;;  %6118 = vmatprep.mubr.msk.f32.mxu0 %vm6598_vm5, %v6594_v1 }
 0x83f   : > { %6121 = vmatprep.subr.mxu0 %v6594_v1 }
 0x845   : > { %6119 = vmatmul.mubr.f32.vlgmr.msra.gmra.mrb[10].mxu0 %v4753_v49 }
 0x846   : > { %6122 = vmatpush3.msk.msra.mxu0 %vm4682_vm7, %v7654_v24  ;;  %6123 = vmatprep.mubr.msk.f32.mxu0 %vm6598_vm5, %v6594_v1 }
 0x847   : > { %6126 = vmatprep.subr.mxu0 %v6594_v1 }
 0x84d   : > { %6124 = vmatmul.mubr.f32.vlgmr.msra.gmra.mrb[10].mxu0 %v4754_v48 }
 0x84e   : > { %6127 = vmatpush3.msra.mxu0 %v4765_v62  ;;  %6128 = vmatprep.mubr.msk.f32.mxu0 %vm6598_vm5, %v6594_v1 }
 0x84f   : > { %6131 = vmatprep.subr.mxu0 %v6594_v1 }
 0x855   : > { %6129 = vmatmul.mubr.f32.vlgmr.msra.gmra.mrb[10].mxu0 %v4752_v39 }
 0x856   : > { %6132 = vmatpush3.msk.msra.mxu0 %vm4682_vm7, %v7654_v24  ;;  %6133 = vmatprep.mubr.msk.f32.mxu0 %vm6598_vm5, %v6594_v1 }
 0x85d   : > { %6134 = vmatmul.mubr.f32.vlgmr.msra.gmra.mrb[10].mxu0 %v4752_v39 }
 0x85e   : > { %6518 = shalt.err (!%p6515_p4)
}
 0x85f   : > { %s6519_s9 = scalar_lea.hbm %s7869_s14, 256  ;;  %s6523_s24 = scalar_lea.hbm %s7929_s2, 512 }
 0x860   : > { %p6520_p7 = scmp.ne.s32.totalorder %s7869_s14, %s6519_s9  ;;  %p6524_p1 = scmp.lt.u32.totalorder %s7869_s14, %s7929_s2 }
 0x861   : > { %p6525_p3 = scmp.lt.u32.totalorder %s6523_s24, %s6519_s9  ;;  %p6527_p9 = scmp.lt.u32.totalorder %s6519_s9, %s7869_s14 }
 0x862   : > { %p6521_p10 = pnand %p6520_p7, %p7951_p11 }
 0x863   : > { %p6526_p8 = por %p6525_p3, %p6524_p1 }
 0x864   : > { %p6522_p12 = pneg %p6521_p10 }
 0x865   : > { %p6528_p0 = por %p6527_p9, %p6526_p8 }
 0x867   : > { %p6529_p6 = pnand %p6528_p0, %p6522_p12 }
 0x869   : > { %6532 = shalt.err (!%p6529_p6)
}
 0x86a   : > { %s6602_s10 = smov 64   ;;  %s6603_s12 = smov 4   ;;  %vm5161_vm5 = vcmask 0  }
 0x86b   : > { %6402 = dma.vmem_to_hbm [thread:$0]  (%p7951_p11), %s7871_s27, 256, %s7869_s14, %s5177_s6, %s6602_s10, %s6602_s10, %s6603_s12  }
 0x86c   : > { %s5433_s5 = sshll.u32 %s7571_s13, 2 }
 0x86d   : > { %s305_s18 = scalar_lea.vmem %s7931_s4, %s5433_s5 }
 0x930   : > { %v5128_v1 = vpop.f32.mrb[10].mxu0 }
 0x931   : > { %v5139_v24 = vrot.slane %v5128_v1, %v7328_v20  ;;  %v6135_v23 = vpop.f32.mrb[11].mxu0 }
 0x933   : > { %v5140_v7 = vcombine.high %v5139_v24, %v5139_v24  ;;  %v5147_v9 = vrot.slane %v5139_v24, %v7328_v20 }
 0x935   : > { %v5154_v38 = vrot.slane %v5140_v7, %v7328_v20  ;;  %v5155_v44 = vcombine.high %v5147_v9, %v5147_v9  ;;  %5162 = vst.msk [vmem:[%s305_s18] sm:$0x1] %vm5161_vm5, %v5147_v9 }
 0x937   : > { %v5156_v16 = vcombine.high %v5154_v38, %v5154_v38  ;;  %5163 = vst.msk [vmem:[%s305_s18 + $0x1] sm:$0x1] %vm5161_vm5, %v5154_v38  ;;  %5164 = vst.msk [vmem:[%s305_s18 + $0x2] sm:$0x1] %vm5161_vm5, %v5155_v44 }
 0x939   : > { %5165 = vst.msk [vmem:[%s305_s18 + $0x3] sm:$0x1] %vm5161_vm5, %v5156_v16 }
 0x93a PF: > { %s5249_s28 = sand.u32 1, %s6567_s15   ;;  %p7952_p11 = scmp.ne.s32.totalorder %s7936_s30, 0 }
 0x93b   : > { %p7953_p13 = scmp.ge.s32.totalorder %s6587_s20, 2  ;;  %s5250_s22 = scalar_lea.sflag [#allocation5], %s5249_s28 }
 0x93d   : > { %p6409_p2 = pnand %p7953_p13, %p7952_p11 }
 0x93f   : > { %6562 = dma.done.wait (!%p6409_p2), %s5250_s22, 256  }
 0x940   : > { %6564 = vsyncadd (!%p6409_p2), %s5250_s22, 4294967040  ;;  %s21_s20 = sadd.s32 1, %s6587_s20   ;;  %s7954_s15 = smov %s6571_s16 }
 0x941   : > { %p18_p5 = scmp.ge.s32.totalorder %s21_s20, 4   ;;  %s7955_s16 = smov %s6575_s17 }
 0x942   : > { %s7956_s17 = smov %s6685_s29  ;;  %s7957_s18 = smov %s6583_s19 }
 0x943   : > { %s7958_s19 = smov %s7960_s23  ;;  %20 = sbr.rel (!%p18_p5) target bundleno = 6 (0x6), region = 166 }
 0x94a   :  { %5278 = vsyncpa [#allocation4], 1 }
 0x94b   :  { %5280 = vsyncpa [#allocation4 + $0x1], 1 }
 0x94c   :  { %5281 = vsyncpa [#allocation5], 1 }
 0x94d   :  { %5283 = vsyncpa [#allocation5 + $0x1], 1 }

</bundles_post_ra>
